<compile_context>
chip_gen: v5e
topology: v5e:2x2
jax: 0.10.0
libtpu: 0.0.40
codegen_flags: <defaults>
</compile_context>

<pallas_src>
import functools

import numpy as np
import jax
import jax.numpy as jnp
from jax import lax
from jax.experimental import pallas as pl
from jax.experimental.pallas import tpu as pltpu


# ----------------------------------------------------------------------------
# Fused CrossAttention kernel (one grid step per `batch_block` batch elements)
# ----------------------------------------------------------------------------

def _cross_attention_kernel(dec_ref, enc_ref, wq_ref, bq_ref, wkv_ref, bkv_ref,
                            gamma_ref, beta_ref, o_ref, zflat_ref,
                            *, num_heads, head_dim, mxu_dtype, exp_dtype, eps):
    H, Dh = num_heads, head_dim
    Bb, Sq, D = dec_ref.shape
    _, Sk, _ = enc_ref.shape

    dec = dec_ref[...]                                   # (Bb, Sq, D)  f32
    dec2 = dec.reshape(Bb * Sq, D)                       # leading-dim collapse only
    enc2 = enc_ref[...].reshape(Bb * Sk, D)              # already mxu_dtype (bf16 stream)

    # --- fused projections: Q on decoded, concatenated K|V on encoded -------
    # MXU inputs at mxu_dtype, f32 accumulation, f32 bias add.
    q = jnp.dot(dec2.astype(mxu_dtype), wq_ref[...],
                preferred_element_type=jnp.float32) + bq_ref[...]      # (Bb*Sq, D)
    kv = jnp.dot(enc2, wkv_ref[...],
                 preferred_element_type=jnp.float32) + bkv_ref[...]    # (Bb*Sk, 2D)
    k = kv[:, :D]
    v = kv[:, D:]
    v = jnp.where(jnp.isnan(v), 0.0, v)                  # v_val[v_val != v_val] = 0

    gamma = gamma_ref[...]                               # (1, D)
    beta = beta_ref[...]                                 # (1, D)

    for bi in range(Bb):                                 # Bb kept small by the wrapper
        qb = q[bi * Sq:(bi + 1) * Sq, :]                 # (Sq, D)  sublane slice
        kb = k[bi * Sk:(bi + 1) * Sk, :]                 # (Sk, D)
        vb = v[bi * Sk:(bi + 1) * Sk, :]                 # (Sk, D)

        # --- per-head attention (CrossAttention: no scaling, no mask) -------
        # Unrolled 2-D matmuls per head keep the MXU path clean; heads-as-a-
        # dot_general-batch-dim would require a (Sq,H,Dh)->(H,Sq,Dh) relayout
        # that is not reliably supported for sub-128 head_dim.
        zs = []
        for h in range(H):
            qh = qb[:, h * Dh:(h + 1) * Dh].astype(mxu_dtype)
            kh = kb[:, h * Dh:(h + 1) * Dh].astype(mxu_dtype)
            vh = vb[:, h * Dh:(h + 1) * Dh].astype(mxu_dtype)

            # q @ k^T without materializing the transpose (contract last dims).
            s = lax.dot_general(qh, kh, (((1,), (1,)), ((), ())),
                                preferred_element_type=jnp.float32)    # (Sq, Sk)
            s = jnp.where(jnp.isnan(s), -jnp.inf, s)     # qk[qk != qk] = -inf

            m = jnp.max(s, axis=-1, keepdims=True)
            if exp_dtype is None:
                e = jnp.exp(s - m)                       # f32 EUP (all chips)
            else:
                # bf16 EUP on v6e/v7x: ~2x exp throughput; stats stay f32.
                e = jnp.exp((s - m).astype(exp_dtype)).astype(jnp.float32)
            denom = jnp.sum(e, axis=-1, keepdims=True)
            # NOTE: approx reciprocal (EUP slot) -> rows sum to ~1 only
            # approximately; all-(-inf) rows yield NaN and are scrubbed below,
            # matching the torch post-softmax NaN->0 path.
            p = e * pl.reciprocal(denom, approx=True)
            p = jnp.where(jnp.isnan(p), 0.0, p)

            zs.append(jnp.dot(p.astype(mxu_dtype), vh,
                              preferred_element_type=jnp.float32))     # (Sq, Dh)

        # One bulk store of the head-major stack: row (h*Sq + sq) == z_init[h, sq, :]
        zflat_ref[...] = jnp.concatenate(zs, axis=0)                   # (H*Sq, Dh)

        # --- torch `.view(B, Sq, -1)` merge of the contiguous (H, Sq, Dh) ----
        # Output row s', lane block j gathers stack row s'*H + j, i.e. lane
        # block j reads rows j, j+H, j+2H, ... (strided sublane read).
        zmerged = jnp.concatenate(
            [zflat_ref[pl.ds(j, Sq, stride=H), :] for j in range(H)], axis=-1)  # (Sq, D)

        # --- fused residual add + LayerNorm epilogue (f32) --------------------
        x = zmerged + dec[bi]
        mu = jnp.mean(x, axis=-1, keepdims=True)
        c = x - mu
        var = jnp.mean(c * c, axis=-1, keepdims=True)
        o_ref[bi] = c * lax.rsqrt(var + eps) * gamma + beta


# ----------------------------------------------------------------------------
# Wrapper: tiling heuristics + weight prep + pallas_call
# ----------------------------------------------------------------------------

def _pick_batch_block(B, Sq, Sk, D):
    """Pack several batch elements per grid step when sequences are short.

    Amortizes the ~0.35us fixed per-grid-step overhead and fills sublanes in
    the projection matmuls, while keeping the per-step f32 working set small
    and the in-kernel Python unroll bounded.
    """
    best = 1
    for bb in range(1, B + 1):
        if B % bb:
            continue
        approx_bytes = 4 * bb * (3 * Sq * D + 3 * Sk * D + Sq * Sk)
        if bb <= 32 and bb * max(Sq, Sk) <= 1024 and approx_bytes <= (4 << 20):
            best = bb
    return best


def _vmem_limit_bytes(Bb, Sq, Sk, D, num_heads, head_dim, mxu_dtype):
    """Scoped-VMEM limit derived from actual buffer sizes (not a flat 48 MiB)."""
    w = jnp.dtype(mxu_dtype).itemsize
    weight_bytes = 3 * D * D * w + 5 * D * 4                 # wq + wk|wv, biases, LN params
    act_bytes = Bb * (2 * Sq * D * 4 + Sk * D * w)           # dec + out blocks (f32), enc block
    lane_pad = -(-head_dim // 128) * 128
    scratch_bytes = num_heads * Sq * lane_pad * 4
    # x2 for pipeline double-buffering, +16 MiB headroom for in-kernel
    # intermediates and Mosaic internal scratch.
    need = 2 * (weight_bytes + act_bytes) + scratch_bytes + (16 << 20)
    return int(min(max(need, 32 << 20), 64 << 20))


def cross_attention_forward(params, encoded, decoded, num_heads, *,
                            mxu_dtype=jnp.bfloat16, exp_dtype=None,
                            batch_block=None, eps=1e-5):
    """CrossAttention.forward(encoded, decoded) -> (B, Sq, D)."""
    B, Sq, D = decoded.shape
    Be, Sk, De = encoded.shape
    assert Be == B and De == D
    if D % num_heads != 0:
        raise ValueError("Embedding Dimension should be divisible by Number of Heads")
    Dh = D // num_heads

    Bb = _pick_batch_block(B, Sq, Sk, D) if batch_block is None else batch_block
    if B % Bb != 0:
        raise ValueError("batch_block must divide the batch size")
    grid = (B // Bb,)

    # Wrapper-side weight prep: pre-cast for the MXU, fuse K|V into one matmul.
    wq = params["wq"].astype(mxu_dtype)                                            # (D, D)
    wkv = jnp.concatenate([params["wk"], params["wv"]], axis=1).astype(mxu_dtype)  # (D, 2D)
    bq = params["bq"].reshape(1, D).astype(jnp.float32)
    bkv = jnp.concatenate([params["bk"].reshape(1, D),
                           params["bv"].reshape(1, D)], axis=1).astype(jnp.float32)
    gamma = params["ln_g"].reshape(1, D).astype(jnp.float32)
    beta = params["ln_b"].reshape(1, D).astype(jnp.float32)

    # Stream `encoded` at MXU precision (halves its DMA bytes when bf16);
    # `decoded` stays f32 for exact residual + LayerNorm semantics.
    encoded = encoded.astype(mxu_dtype)
    decoded = decoded.astype(jnp.float32)

    kernel = functools.partial(_cross_attention_kernel,
                               num_heads=num_heads, head_dim=Dh,
                               mxu_dtype=mxu_dtype, exp_dtype=exp_dtype, eps=eps)

    return pl.pallas_call(
        kernel,
        out_shape=jax.ShapeDtypeStruct((B, Sq, D), jnp.float32),
        grid=grid,
        in_specs=[
            pl.BlockSpec((Bb, Sq, D), lambda b: (b, 0, 0)),   # decoded block (f32)
            pl.BlockSpec((Bb, Sk, D), lambda b: (b, 0, 0)),   # encoded block (mxu dtype)
            pl.BlockSpec((D, D), lambda b: (0, 0)),           # wq        (resident)
            pl.BlockSpec((1, D), lambda b: (0, 0)),           # bq
            pl.BlockSpec((D, 2 * D), lambda b: (0, 0)),       # wk | wv   (resident)
            pl.BlockSpec((1, 2 * D), lambda b: (0, 0)),       # bk | bv
            pl.BlockSpec((1, D), lambda b: (0, 0)),           # LayerNorm gamma
            pl.BlockSpec((1, D), lambda b: (0, 0)),           # LayerNorm beta
        ],
        out_specs=pl.BlockSpec((Bb, Sq, D), lambda b: (b, 0, 0)),
        scratch_shapes=[pltpu.VMEM((num_heads * Sq, Dh), jnp.float32)],
        compiler_params=pltpu.CompilerParams(
            dimension_semantics=("parallel",),
            vmem_limit_bytes=_vmem_limit_bytes(Bb, Sq, Sk, D, num_heads, Dh,
                                               mxu_dtype)),
    )(decoded, encoded, wq, bq, wkv, bkv, gamma, beta)


# ----------------------------------------------------------------------------
# Deterministic PyTorch-style init + pure-JAX reference (mirrors the torch code)
# ----------------------------------------------------------------------------

def _init_linear(key, din, dout):
    kw, kb = jax.random.split(key)
    bound = 1.0 / np.sqrt(din)
    w = jax.random.uniform(kw, (din, dout), jnp.float32, -bound, bound)
    b = jax.random.uniform(kb, (1, dout), jnp.float32, -bound, bound)
    return w, b


def init_params(key, d_model):
    kq, kk, kv = jax.random.split(key, 3)
    p = {}
    p["wq"], p["bq"] = _init_linear(kq, d_model, d_model)
    p["wk"], p["bk"] = _init_linear(kk, d_model, d_model)
    p["wv"], p["bv"] = _init_linear(kv, d_model, d_model)
    p["ln_g"] = jnp.ones((d_model,), jnp.float32)
    p["ln_b"] = jnp.zeros((d_model,), jnp.float32)
    return p


def reference_forward(params, encoded, decoded, num_heads, eps=1e-5):
    """Pure-jnp (f32) mirror of the PyTorch CrossAttention.forward."""
    B, Sq, D = decoded.shape
    Dh = D // num_heads
    q = decoded @ params["wq"] + params["bq"]
    k = encoded @ params["wk"] + params["bk"]
    v = encoded @ params["wv"] + params["bv"]

    def split(x):
        return x.reshape(x.shape[0], x.shape[1], num_heads, Dh).transpose(0, 2, 1, 3)

    q, k, v = split(q), split(k), split(v)
    s = jnp.einsum("bhqd,bhkd->bhqk", q, k)                  # no scaling
    s = jnp.where(jnp.isnan(s), -jnp.inf, s)
    a = jax.nn.softmax(s, axis=-1)
    a = jnp.where(jnp.isnan(a), 0.0, a)
    v = jnp.where(jnp.isnan(v), 0.0, v)
    z = jnp.einsum("bhqk,bhkd->bhqd", a, v)                  # (B, H, Sq, Dh)
    z = z.reshape(B, Sq, D)                                  # torch .view quirk
    x = z + decoded
    mu = x.mean(-1, keepdims=True)
    var = ((x - mu) ** 2).mean(-1, keepdims=True)
    return (x - mu) / jnp.sqrt(var + eps) * params["ln_g"] + params["ln_b"]


# ----------------------------------------------------------------------------
if __name__ == "__main__":
    D_MODEL, NUM_HEADS = 32, 4
    B, S_DEC, S_ENC = 2, 8, 16

    key = jax.random.PRNGKey(0)
    k_par, k_enc, k_dec = jax.random.split(key, 3)
    params = init_params(k_par, D_MODEL)
    encoded = jax.random.normal(k_enc, (B, S_ENC, D_MODEL), jnp.float32)
    decoded = jax.random.normal(k_dec, (B, S_DEC, D_MODEL), jnp.float32)

    ref = reference_forward(params, encoded, decoded, NUM_HEADS)

    # Recommended config: bf16 MXU inputs + bf16-streamed encoded, f32 epilogue.
    fwd_bf16 = jax.jit(functools.partial(cross_attention_forward,
                                         num_heads=NUM_HEADS,
                                         mxu_dtype=jnp.bfloat16))
    out_bf16 = jax.block_until_ready(fwd_bf16(params, encoded, decoded))
    np.testing.assert_allclose(np.asarray(out_bf16), np.asarray(ref),
                               rtol=5e-2, atol=5e-2)

    # f32 MXU variant: tighter check of the fused kernel's semantics
    # (tolerance covers the approximate-reciprocal softmax denominator).
    fwd_f32 = jax.jit(functools.partial(cross_attention_forward,
                                        num_heads=NUM_HEADS,
                                        mxu_dtype=jnp.float32))
    out_f32 = jax.block_until_ready(fwd_f32(params, encoded, decoded))
    np.testing.assert_allclose(np.asarray(out_f32), np.asarray(ref),
                               rtol=1e-2, atol=1e-2)

    print("KERNEL_OK")
</pallas_src>

<mosaic_0001>
module attributes {stable_mosaic.version = 11 : i64} {
  func.func @_cross_attention_kernel(%arg0: i32, %arg1: memref<2x8x32xf32, #tpu.memory_space<vmem>>, %arg2: memref<2x16x32xbf16, #tpu.memory_space<vmem>>, %arg3: memref<32x32xbf16, #tpu.memory_space<vmem>>, %arg4: memref<1x32xf32, #tpu.memory_space<vmem>>, %arg5: memref<32x64xbf16, #tpu.memory_space<vmem>>, %arg6: memref<1x64xf32, #tpu.memory_space<vmem>>, %arg7: memref<1x32xf32, #tpu.memory_space<vmem>>, %arg8: memref<1x32xf32, #tpu.memory_space<vmem>>, %arg9: memref<2x8x32xf32, #tpu.memory_space<vmem>>, %arg10: memref<32x8xf32, #tpu.memory_space<vmem>>) attributes {dimension_semantics = [#tpu.dimension_semantics<parallel>], iteration_bounds = array<i64: 1>, scalar_prefetch = 0 : i64, scratch_operands = 1 : i64, tpu.core_type = #tpu.core_type<tc>, window_params = [{transform_indices = @transform_0, window_bounds = array<i64: 2, 8, 32>}, {transform_indices = @transform_1, window_bounds = array<i64: 2, 16, 32>}, {pipeline_mode = #tpu.pipeline_mode<synchronous>, transform_indices = @transform_2, window_bounds = array<i64: 32, 32>}, {pipeline_mode = #tpu.pipeline_mode<synchronous>, transform_indices = @transform_3, window_bounds = array<i64: 1, 32>}, {pipeline_mode = #tpu.pipeline_mode<synchronous>, transform_indices = @transform_4, window_bounds = array<i64: 32, 64>}, {pipeline_mode = #tpu.pipeline_mode<synchronous>, transform_indices = @transform_5, window_bounds = array<i64: 1, 64>}, {pipeline_mode = #tpu.pipeline_mode<synchronous>, transform_indices = @transform_6, window_bounds = array<i64: 1, 32>}, {pipeline_mode = #tpu.pipeline_mode<synchronous>, transform_indices = @transform_7, window_bounds = array<i64: 1, 32>}, {transform_indices = @transform_8, window_bounds = array<i64: 2, 8, 32>}]} {
    %c0 = arith.constant 0 : index
    %c0_0 = arith.constant 0 : index
    %c0_1 = arith.constant 0 : index
    %0 = vector.load %arg1[%c0, %c0_0, %c0_1] : memref<2x8x32xf32, #tpu.memory_space<vmem>>, vector<2x8x32xf32>
    %1 = vector.shape_cast %0 : vector<2x8x32xf32> to vector<16x32xf32>
    %c0_2 = arith.constant 0 : index
    %c0_3 = arith.constant 0 : index
    %c0_4 = arith.constant 0 : index
    %2 = vector.load %arg2[%c0_2, %c0_3, %c0_4] : memref<2x16x32xbf16, #tpu.memory_space<vmem>>, vector<2x16x32xbf16>
    %3 = vector.shape_cast %2 : vector<2x16x32xbf16> to vector<32x32xbf16>
    %4 = arith.truncf %1 : vector<16x32xf32> to vector<16x32xbf16>
    %c0_5 = arith.constant 0 : index
    %c0_6 = arith.constant 0 : index
    %5 = vector.load %arg3[%c0_5, %c0_6] : memref<32x32xbf16, #tpu.memory_space<vmem>>, vector<32x32xbf16>
    %cst = arith.constant dense<0.000000e+00> : vector<16x32xf32>
    %6 = tpu.matmul %4, %5, %cst {dimension_numbers = #tpu.dot_dimension_numbers<[1], [0], [0], [1], [0, 0, 1, 1], [], []>} : vector<16x32xbf16>, vector<32x32xbf16>, vector<16x32xf32> -> vector<16x32xf32>
    %c0_7 = arith.constant 0 : index
    %c0_8 = arith.constant 0 : index
    %7 = vector.load %arg4[%c0_7, %c0_8] : memref<1x32xf32, #tpu.memory_space<vmem>>, vector<1x32xf32>
    %8 = vector.broadcast %7 : vector<1x32xf32> to vector<16x32xf32>
    %9 = arith.addf %6, %8 : vector<16x32xf32>
    %c0_9 = arith.constant 0 : index
    %c0_10 = arith.constant 0 : index
    %10 = vector.load %arg5[%c0_9, %c0_10] : memref<32x64xbf16, #tpu.memory_space<vmem>>, vector<32x64xbf16>
    %cst_11 = arith.constant dense<0.000000e+00> : vector<32x64xf32>
    %11 = tpu.matmul %3, %10, %cst_11 {dimension_numbers = #tpu.dot_dimension_numbers<[1], [0], [0], [1], [0, 0, 1, 1], [], []>} : vector<32x32xbf16>, vector<32x64xbf16>, vector<32x64xf32> -> vector<32x64xf32>
    %c0_12 = arith.constant 0 : index
    %c0_13 = arith.constant 0 : index
    %12 = vector.load %arg6[%c0_12, %c0_13] : memref<1x64xf32, #tpu.memory_space<vmem>>, vector<1x64xf32>
    %13 = vector.broadcast %12 : vector<1x64xf32> to vector<32x64xf32>
    %14 = arith.addf %11, %13 : vector<32x64xf32>
    %15 = vector.extract_strided_slice %14 {offsets = [0, 0], sizes = [32, 32], strides = [1, 1]} : vector<32x64xf32> to vector<32x32xf32>
    %16 = vector.extract_strided_slice %14 {offsets = [0, 32], sizes = [32, 32], strides = [1, 1]} : vector<32x64xf32> to vector<32x32xf32>
    %17 = arith.cmpf one, %16, %16 : vector<32x32xf32>
    %cst_14 = arith.constant 0.000000e+00 : f32
    %18 = vector.broadcast %cst_14 : f32 to vector<32x32xf32>
    %19 = arith.select %17, %18, %16 : vector<32x32xi1>, vector<32x32xf32>
    %c0_15 = arith.constant 0 : index
    %c0_16 = arith.constant 0 : index
    %20 = vector.load %arg7[%c0_15, %c0_16] : memref<1x32xf32, #tpu.memory_space<vmem>>, vector<1x32xf32>
    %c0_17 = arith.constant 0 : index
    %c0_18 = arith.constant 0 : index
    %21 = vector.load %arg8[%c0_17, %c0_18] : memref<1x32xf32, #tpu.memory_space<vmem>>, vector<1x32xf32>
    %22 = vector.extract_strided_slice %9 {offsets = [0, 0], sizes = [8, 32], strides = [1, 1]} : vector<16x32xf32> to vector<8x32xf32>
    %23 = vector.extract_strided_slice %15 {offsets = [0, 0], sizes = [16, 32], strides = [1, 1]} : vector<32x32xf32> to vector<16x32xf32>
    %24 = vector.extract_strided_slice %19 {offsets = [0, 0], sizes = [16, 32], strides = [1, 1]} : vector<32x32xf32> to vector<16x32xf32>
    %25 = vector.extract_strided_slice %22 {offsets = [0, 0], sizes = [8, 8], strides = [1, 1]} : vector<8x32xf32> to vector<8x8xf32>
    %26 = arith.truncf %25 : vector<8x8xf32> to vector<8x8xbf16>
    %27 = vector.extract_strided_slice %23 {offsets = [0, 0], sizes = [16, 8], strides = [1, 1]} : vector<16x32xf32> to vector<16x8xf32>
    %28 = arith.truncf %27 : vector<16x8xf32> to vector<16x8xbf16>
    %29 = vector.extract_strided_slice %24 {offsets = [0, 0], sizes = [16, 8], strides = [1, 1]} : vector<16x32xf32> to vector<16x8xf32>
    %30 = arith.truncf %29 : vector<16x8xf32> to vector<16x8xbf16>
    %cst_19 = arith.constant dense<0.000000e+00> : vector<8x16xf32>
    %31 = tpu.matmul %26, %28, %cst_19 {dimension_numbers = #tpu.dot_dimension_numbers<[1], [1], [0], [0], [0, 0, 1, 0], [], []>} : vector<8x8xbf16>, vector<16x8xbf16>, vector<8x16xf32> -> vector<8x16xf32>
    %32 = arith.cmpf one, %31, %31 : vector<8x16xf32>
    %cst_20 = arith.constant 0xFF800000 : f32
    %33 = vector.broadcast %cst_20 : f32 to vector<8x16xf32>
    %34 = arith.select %32, %33, %31 : vector<8x16xi1>, vector<8x16xf32>
    %cst_21 = arith.constant dense<0xFF800000> : vector<8xf32>
    %35 = vector.multi_reduction <maximumf>, %34, %cst_21 [1] : vector<8x16xf32> to vector<8xf32>
    %36 = vector.shape_cast %35 : vector<8xf32> to vector<8x1xf32>
    %37 = vector.broadcast %36 : vector<8x1xf32> to vector<8x16xf32>
    %38 = arith.subf %34, %37 : vector<8x16xf32>
    %39 = math.exp %38 : vector<8x16xf32>
    %cst_22 = arith.constant dense<0.000000e+00> : vector<8xf32>
    %40 = vector.multi_reduction <add>, %39, %cst_22 [1] : vector<8x16xf32> to vector<8xf32>
    %41 = vector.shape_cast %40 : vector<8xf32> to vector<8x1xf32>
    %42 = tpu.reciprocal %41 {approx = true} : vector<8x1xf32> -> vector<8x1xf32>
    %43 = vector.broadcast %42 : vector<8x1xf32> to vector<8x16xf32>
    %44 = arith.mulf %39, %43 : vector<8x16xf32>
    %45 = arith.cmpf one, %44, %44 : vector<8x16xf32>
    %cst_23 = arith.constant 0.000000e+00 : f32
    %46 = vector.broadcast %cst_23 : f32 to vector<8x16xf32>
    %47 = arith.select %45, %46, %44 : vector<8x16xi1>, vector<8x16xf32>
    %48 = arith.truncf %47 : vector<8x16xf32> to vector<8x16xbf16>
    %cst_24 = arith.constant dense<0.000000e+00> : vector<8x8xf32>
    %49 = tpu.matmul %48, %30, %cst_24 {dimension_numbers = #tpu.dot_dimension_numbers<[1], [0], [0], [1], [0, 0, 1, 1], [], []>} : vector<8x16xbf16>, vector<16x8xbf16>, vector<8x8xf32> -> vector<8x8xf32>
    %50 = vector.extract_strided_slice %22 {offsets = [0, 8], sizes = [8, 8], strides = [1, 1]} : vector<8x32xf32> to vector<8x8xf32>
    %51 = arith.truncf %50 : vector<8x8xf32> to vector<8x8xbf16>
    %52 = vector.extract_strided_slice %23 {offsets = [0, 8], sizes = [16, 8], strides = [1, 1]} : vector<16x32xf32> to vector<16x8xf32>
    %53 = arith.truncf %52 : vector<16x8xf32> to vector<16x8xbf16>
    %54 = vector.extract_strided_slice %24 {offsets = [0, 8], sizes = [16, 8], strides = [1, 1]} : vector<16x32xf32> to vector<16x8xf32>
    %55 = arith.truncf %54 : vector<16x8xf32> to vector<16x8xbf16>
    %cst_25 = arith.constant dense<0.000000e+00> : vector<8x16xf32>
    %56 = tpu.matmul %51, %53, %cst_25 {dimension_numbers = #tpu.dot_dimension_numbers<[1], [1], [0], [0], [0, 0, 1, 0], [], []>} : vector<8x8xbf16>, vector<16x8xbf16>, vector<8x16xf32> -> vector<8x16xf32>
    %57 = arith.cmpf one, %56, %56 : vector<8x16xf32>
    %cst_26 = arith.constant 0xFF800000 : f32
    %58 = vector.broadcast %cst_26 : f32 to vector<8x16xf32>
    %59 = arith.select %57, %58, %56 : vector<8x16xi1>, vector<8x16xf32>
    %cst_27 = arith.constant dense<0xFF800000> : vector<8xf32>
    %60 = vector.multi_reduction <maximumf>, %59, %cst_27 [1] : vector<8x16xf32> to vector<8xf32>
    %61 = vector.shape_cast %60 : vector<8xf32> to vector<8x1xf32>
    %62 = vector.broadcast %61 : vector<8x1xf32> to vector<8x16xf32>
    %63 = arith.subf %59, %62 : vector<8x16xf32>
    %64 = math.exp %63 : vector<8x16xf32>
    %cst_28 = arith.constant dense<0.000000e+00> : vector<8xf32>
    %65 = vector.multi_reduction <add>, %64, %cst_28 [1] : vector<8x16xf32> to vector<8xf32>
    %66 = vector.shape_cast %65 : vector<8xf32> to vector<8x1xf32>
    %67 = tpu.reciprocal %66 {approx = true} : vector<8x1xf32> -> vector<8x1xf32>
    %68 = vector.broadcast %67 : vector<8x1xf32> to vector<8x16xf32>
    %69 = arith.mulf %64, %68 : vector<8x16xf32>
    %70 = arith.cmpf one, %69, %69 : vector<8x16xf32>
    %cst_29 = arith.constant 0.000000e+00 : f32
    %71 = vector.broadcast %cst_29 : f32 to vector<8x16xf32>
    %72 = arith.select %70, %71, %69 : vector<8x16xi1>, vector<8x16xf32>
    %73 = arith.truncf %72 : vector<8x16xf32> to vector<8x16xbf16>
    %cst_30 = arith.constant dense<0.000000e+00> : vector<8x8xf32>
    %74 = tpu.matmul %73, %55, %cst_30 {dimension_numbers = #tpu.dot_dimension_numbers<[1], [0], [0], [1], [0, 0, 1, 1], [], []>} : vector<8x16xbf16>, vector<16x8xbf16>, vector<8x8xf32> -> vector<8x8xf32>
    %75 = vector.extract_strided_slice %22 {offsets = [0, 16], sizes = [8, 8], strides = [1, 1]} : vector<8x32xf32> to vector<8x8xf32>
    %76 = arith.truncf %75 : vector<8x8xf32> to vector<8x8xbf16>
    %77 = vector.extract_strided_slice %23 {offsets = [0, 16], sizes = [16, 8], strides = [1, 1]} : vector<16x32xf32> to vector<16x8xf32>
    %78 = arith.truncf %77 : vector<16x8xf32> to vector<16x8xbf16>
    %79 = vector.extract_strided_slice %24 {offsets = [0, 16], sizes = [16, 8], strides = [1, 1]} : vector<16x32xf32> to vector<16x8xf32>
    %80 = arith.truncf %79 : vector<16x8xf32> to vector<16x8xbf16>
    %cst_31 = arith.constant dense<0.000000e+00> : vector<8x16xf32>
    %81 = tpu.matmul %76, %78, %cst_31 {dimension_numbers = #tpu.dot_dimension_numbers<[1], [1], [0], [0], [0, 0, 1, 0], [], []>} : vector<8x8xbf16>, vector<16x8xbf16>, vector<8x16xf32> -> vector<8x16xf32>
    %82 = arith.cmpf one, %81, %81 : vector<8x16xf32>
    %cst_32 = arith.constant 0xFF800000 : f32
    %83 = vector.broadcast %cst_32 : f32 to vector<8x16xf32>
    %84 = arith.select %82, %83, %81 : vector<8x16xi1>, vector<8x16xf32>
    %cst_33 = arith.constant dense<0xFF800000> : vector<8xf32>
    %85 = vector.multi_reduction <maximumf>, %84, %cst_33 [1] : vector<8x16xf32> to vector<8xf32>
    %86 = vector.shape_cast %85 : vector<8xf32> to vector<8x1xf32>
    %87 = vector.broadcast %86 : vector<8x1xf32> to vector<8x16xf32>
    %88 = arith.subf %84, %87 : vector<8x16xf32>
    %89 = math.exp %88 : vector<8x16xf32>
    %cst_34 = arith.constant dense<0.000000e+00> : vector<8xf32>
    %90 = vector.multi_reduction <add>, %89, %cst_34 [1] : vector<8x16xf32> to vector<8xf32>
    %91 = vector.shape_cast %90 : vector<8xf32> to vector<8x1xf32>
    %92 = tpu.reciprocal %91 {approx = true} : vector<8x1xf32> -> vector<8x1xf32>
    %93 = vector.broadcast %92 : vector<8x1xf32> to vector<8x16xf32>
    %94 = arith.mulf %89, %93 : vector<8x16xf32>
    %95 = arith.cmpf one, %94, %94 : vector<8x16xf32>
    %cst_35 = arith.constant 0.000000e+00 : f32
    %96 = vector.broadcast %cst_35 : f32 to vector<8x16xf32>
    %97 = arith.select %95, %96, %94 : vector<8x16xi1>, vector<8x16xf32>
    %98 = arith.truncf %97 : vector<8x16xf32> to vector<8x16xbf16>
    %cst_36 = arith.constant dense<0.000000e+00> : vector<8x8xf32>
    %99 = tpu.matmul %98, %80, %cst_36 {dimension_numbers = #tpu.dot_dimension_numbers<[1], [0], [0], [1], [0, 0, 1, 1], [], []>} : vector<8x16xbf16>, vector<16x8xbf16>, vector<8x8xf32> -> vector<8x8xf32>
    %100 = vector.extract_strided_slice %22 {offsets = [0, 24], sizes = [8, 8], strides = [1, 1]} : vector<8x32xf32> to vector<8x8xf32>
    %101 = arith.truncf %100 : vector<8x8xf32> to vector<8x8xbf16>
    %102 = vector.extract_strided_slice %23 {offsets = [0, 24], sizes = [16, 8], strides = [1, 1]} : vector<16x32xf32> to vector<16x8xf32>
    %103 = arith.truncf %102 : vector<16x8xf32> to vector<16x8xbf16>
    %104 = vector.extract_strided_slice %24 {offsets = [0, 24], sizes = [16, 8], strides = [1, 1]} : vector<16x32xf32> to vector<16x8xf32>
    %105 = arith.truncf %104 : vector<16x8xf32> to vector<16x8xbf16>
    %cst_37 = arith.constant dense<0.000000e+00> : vector<8x16xf32>
    %106 = tpu.matmul %101, %103, %cst_37 {dimension_numbers = #tpu.dot_dimension_numbers<[1], [1], [0], [0], [0, 0, 1, 0], [], []>} : vector<8x8xbf16>, vector<16x8xbf16>, vector<8x16xf32> -> vector<8x16xf32>
    %107 = arith.cmpf one, %106, %106 : vector<8x16xf32>
    %cst_38 = arith.constant 0xFF800000 : f32
    %108 = vector.broadcast %cst_38 : f32 to vector<8x16xf32>
    %109 = arith.select %107, %108, %106 : vector<8x16xi1>, vector<8x16xf32>
    %cst_39 = arith.constant dense<0xFF800000> : vector<8xf32>
    %110 = vector.multi_reduction <maximumf>, %109, %cst_39 [1] : vector<8x16xf32> to vector<8xf32>
    %111 = vector.shape_cast %110 : vector<8xf32> to vector<8x1xf32>
    %112 = vector.broadcast %111 : vector<8x1xf32> to vector<8x16xf32>
    %113 = arith.subf %109, %112 : vector<8x16xf32>
    %114 = math.exp %113 : vector<8x16xf32>
    %cst_40 = arith.constant dense<0.000000e+00> : vector<8xf32>
    %115 = vector.multi_reduction <add>, %114, %cst_40 [1] : vector<8x16xf32> to vector<8xf32>
    %116 = vector.shape_cast %115 : vector<8xf32> to vector<8x1xf32>
    %117 = tpu.reciprocal %116 {approx = true} : vector<8x1xf32> -> vector<8x1xf32>
    %118 = vector.broadcast %117 : vector<8x1xf32> to vector<8x16xf32>
    %119 = arith.mulf %114, %118 : vector<8x16xf32>
    %120 = arith.cmpf one, %119, %119 : vector<8x16xf32>
    %cst_41 = arith.constant 0.000000e+00 : f32
    %121 = vector.broadcast %cst_41 : f32 to vector<8x16xf32>
    %122 = arith.select %120, %121, %119 : vector<8x16xi1>, vector<8x16xf32>
    %123 = arith.truncf %122 : vector<8x16xf32> to vector<8x16xbf16>
    %cst_42 = arith.constant dense<0.000000e+00> : vector<8x8xf32>
    %124 = tpu.matmul %123, %105, %cst_42 {dimension_numbers = #tpu.dot_dimension_numbers<[1], [0], [0], [1], [0, 0, 1, 1], [], []>} : vector<8x16xbf16>, vector<16x8xbf16>, vector<8x8xf32> -> vector<8x8xf32>
    %125 = tpu.concatenate %49, %74, %99, %124 in 0 : vector<8x8xf32>, vector<8x8xf32>, vector<8x8xf32>, vector<8x8xf32> -> vector<32x8xf32>
    %c0_43 = arith.constant 0 : index
    %c0_44 = arith.constant 0 : index
    %126 = vector.load %arg10[%c0_43, %c0_44] : memref<32x8xf32, #tpu.memory_space<vmem>>, vector<32x8xf32>
    tpu.vector_store %arg10[%c0_43, %c0_44], %125 {strides = array<i32>} : memref<32x8xf32, #tpu.memory_space<vmem>>, vector<32x8xf32>,
    %c0_45 = arith.constant 0 : index
    %c0_46 = arith.constant 0 : index
    %127 = tpu.strided_load %arg10[%c0_45, %c0_46] {strides = array<i32: 4, 1>} : memref<32x8xf32, #tpu.memory_space<vmem>>, vector<8x8xf32>
    %c1 = arith.constant 1 : index
    %c0_47 = arith.constant 0 : index
    %128 = tpu.strided_load %arg10[%c1, %c0_47] {strides = array<i32: 4, 1>} : memref<32x8xf32, #tpu.memory_space<vmem>>, vector<8x8xf32>
    %c2 = arith.constant 2 : index
    %c0_48 = arith.constant 0 : index
    %129 = tpu.strided_load %arg10[%c2, %c0_48] {strides = array<i32: 4, 1>} : memref<32x8xf32, #tpu.memory_space<vmem>>, vector<8x8xf32>
    %c3 = arith.constant 3 : index
    %c0_49 = arith.constant 0 : index
    %130 = tpu.strided_load %arg10[%c3, %c0_49] {strides = array<i32: 4, 1>} : memref<32x8xf32, #tpu.memory_space<vmem>>, vector<8x8xf32>
    %131 = tpu.concatenate %127, %128, %129, %130 in 1 : vector<8x8xf32>, vector<8x8xf32>, vector<8x8xf32>, vector<8x8xf32> -> vector<8x32xf32>
    %132 = vector.extract_strided_slice %0 {offsets = [0, 0, 0], sizes = [1, 8, 32], strides = [1, 1, 1]} : vector<2x8x32xf32> to vector<1x8x32xf32>
    %133 = vector.shape_cast %132 : vector<1x8x32xf32> to vector<8x32xf32>
    %134 = arith.addf %131, %133 : vector<8x32xf32>
    %cst_50 = arith.constant dense<0.000000e+00> : vector<8xf32>
    %135 = vector.multi_reduction <add>, %134, %cst_50 [1] : vector<8x32xf32> to vector<8xf32>
    %136 = vector.shape_cast %135 : vector<8xf32> to vector<8x1xf32>
    %cst_51 = arith.constant 3.200000e+01 : f32
    %137 = vector.broadcast %cst_51 : f32 to vector<8x1xf32>
    %138 = arith.divf %136, %137 : vector<8x1xf32>
    %139 = vector.broadcast %138 : vector<8x1xf32> to vector<8x32xf32>
    %140 = arith.subf %134, %139 : vector<8x32xf32>
    %141 = arith.mulf %140, %140 : vector<8x32xf32>
    %cst_52 = arith.constant dense<0.000000e+00> : vector<8xf32>
    %142 = vector.multi_reduction <add>, %141, %cst_52 [1] : vector<8x32xf32> to vector<8xf32>
    %143 = vector.shape_cast %142 : vector<8xf32> to vector<8x1xf32>
    %cst_53 = arith.constant 3.200000e+01 : f32
    %144 = vector.broadcast %cst_53 : f32 to vector<8x1xf32>
    %145 = arith.divf %143, %144 : vector<8x1xf32>
    %cst_54 = arith.constant 9.99999974E-6 : f32
    %146 = vector.broadcast %cst_54 : f32 to vector<8x1xf32>
    %147 = arith.addf %145, %146 : vector<8x1xf32>
    %148 = math.rsqrt %147 : vector<8x1xf32>
    %149 = vector.broadcast %148 : vector<8x1xf32> to vector<8x32xf32>
    %150 = arith.mulf %140, %149 : vector<8x32xf32>
    %151 = vector.broadcast %20 : vector<1x32xf32> to vector<8x32xf32>
    %152 = arith.mulf %150, %151 : vector<8x32xf32>
    %153 = vector.broadcast %21 : vector<1x32xf32> to vector<8x32xf32>
    %154 = arith.addf %152, %153 : vector<8x32xf32>
    %c0_55 = arith.constant 0 : index
    %c0_56 = arith.constant 0 : index
    %c0_57 = arith.constant 0 : index
    %155 = vector.load %arg9[%c0_55, %c0_56, %c0_57] : memref<2x8x32xf32, #tpu.memory_space<vmem>>, vector<1x8x32xf32>
    %156 = vector.shape_cast %155 : vector<1x8x32xf32> to vector<8x32xf32>
    %157 = vector.shape_cast %154 : vector<8x32xf32> to vector<1x8x32xf32>
    tpu.vector_store %arg9[%c0_55, %c0_56, %c0_57], %157 {strides = array<i32>} : memref<2x8x32xf32, #tpu.memory_space<vmem>>, vector<1x8x32xf32>,
    %158 = vector.extract_strided_slice %9 {offsets = [8, 0], sizes = [8, 32], strides = [1, 1]} : vector<16x32xf32> to vector<8x32xf32>
    %159 = vector.extract_strided_slice %15 {offsets = [16, 0], sizes = [16, 32], strides = [1, 1]} : vector<32x32xf32> to vector<16x32xf32>
    %160 = vector.extract_strided_slice %19 {offsets = [16, 0], sizes = [16, 32], strides = [1, 1]} : vector<32x32xf32> to vector<16x32xf32>
    %161 = vector.extract_strided_slice %158 {offsets = [0, 0], sizes = [8, 8], strides = [1, 1]} : vector<8x32xf32> to vector<8x8xf32>
    %162 = arith.truncf %161 : vector<8x8xf32> to vector<8x8xbf16>
    %163 = vector.extract_strided_slice %159 {offsets = [0, 0], sizes = [16, 8], strides = [1, 1]} : vector<16x32xf32> to vector<16x8xf32>
    %164 = arith.truncf %163 : vector<16x8xf32> to vector<16x8xbf16>
    %165 = vector.extract_strided_slice %160 {offsets = [0, 0], sizes = [16, 8], strides = [1, 1]} : vector<16x32xf32> to vector<16x8xf32>
    %166 = arith.truncf %165 : vector<16x8xf32> to vector<16x8xbf16>
    %cst_58 = arith.constant dense<0.000000e+00> : vector<8x16xf32>
    %167 = tpu.matmul %162, %164, %cst_58 {dimension_numbers = #tpu.dot_dimension_numbers<[1], [1], [0], [0], [0, 0, 1, 0], [], []>} : vector<8x8xbf16>, vector<16x8xbf16>, vector<8x16xf32> -> vector<8x16xf32>
    %168 = arith.cmpf one, %167, %167 : vector<8x16xf32>
    %cst_59 = arith.constant 0xFF800000 : f32
    %169 = vector.broadcast %cst_59 : f32 to vector<8x16xf32>
    %170 = arith.select %168, %169, %167 : vector<8x16xi1>, vector<8x16xf32>
    %cst_60 = arith.constant dense<0xFF800000> : vector<8xf32>
    %171 = vector.multi_reduction <maximumf>, %170, %cst_60 [1] : vector<8x16xf32> to vector<8xf32>
    %172 = vector.shape_cast %171 : vector<8xf32> to vector<8x1xf32>
    %173 = vector.broadcast %172 : vector<8x1xf32> to vector<8x16xf32>
    %174 = arith.subf %170, %173 : vector<8x16xf32>
    %175 = math.exp %174 : vector<8x16xf32>
    %cst_61 = arith.constant dense<0.000000e+00> : vector<8xf32>
    %176 = vector.multi_reduction <add>, %175, %cst_61 [1] : vector<8x16xf32> to vector<8xf32>
    %177 = vector.shape_cast %176 : vector<8xf32> to vector<8x1xf32>
    %178 = tpu.reciprocal %177 {approx = true} : vector<8x1xf32> -> vector<8x1xf32>
    %179 = vector.broadcast %178 : vector<8x1xf32> to vector<8x16xf32>
    %180 = arith.mulf %175, %179 : vector<8x16xf32>
    %181 = arith.cmpf one, %180, %180 : vector<8x16xf32>
    %cst_62 = arith.constant 0.000000e+00 : f32
    %182 = vector.broadcast %cst_62 : f32 to vector<8x16xf32>
    %183 = arith.select %181, %182, %180 : vector<8x16xi1>, vector<8x16xf32>
    %184 = arith.truncf %183 : vector<8x16xf32> to vector<8x16xbf16>
    %cst_63 = arith.constant dense<0.000000e+00> : vector<8x8xf32>
    %185 = tpu.matmul %184, %166, %cst_63 {dimension_numbers = #tpu.dot_dimension_numbers<[1], [0], [0], [1], [0, 0, 1, 1], [], []>} : vector<8x16xbf16>, vector<16x8xbf16>, vector<8x8xf32> -> vector<8x8xf32>
    %186 = vector.extract_strided_slice %158 {offsets = [0, 8], sizes = [8, 8], strides = [1, 1]} : vector<8x32xf32> to vector<8x8xf32>
    %187 = arith.truncf %186 : vector<8x8xf32> to vector<8x8xbf16>
    %188 = vector.extract_strided_slice %159 {offsets = [0, 8], sizes = [16, 8], strides = [1, 1]} : vector<16x32xf32> to vector<16x8xf32>
    %189 = arith.truncf %188 : vector<16x8xf32> to vector<16x8xbf16>
    %190 = vector.extract_strided_slice %160 {offsets = [0, 8], sizes = [16, 8], strides = [1, 1]} : vector<16x32xf32> to vector<16x8xf32>
    %191 = arith.truncf %190 : vector<16x8xf32> to vector<16x8xbf16>
    %cst_64 = arith.constant dense<0.000000e+00> : vector<8x16xf32>
    %192 = tpu.matmul %187, %189, %cst_64 {dimension_numbers = #tpu.dot_dimension_numbers<[1], [1], [0], [0], [0, 0, 1, 0], [], []>} : vector<8x8xbf16>, vector<16x8xbf16>, vector<8x16xf32> -> vector<8x16xf32>
    %193 = arith.cmpf one, %192, %192 : vector<8x16xf32>
    %cst_65 = arith.constant 0xFF800000 : f32
    %194 = vector.broadcast %cst_65 : f32 to vector<8x16xf32>
    %195 = arith.select %193, %194, %192 : vector<8x16xi1>, vector<8x16xf32>
    %cst_66 = arith.constant dense<0xFF800000> : vector<8xf32>
    %196 = vector.multi_reduction <maximumf>, %195, %cst_66 [1] : vector<8x16xf32> to vector<8xf32>
    %197 = vector.shape_cast %196 : vector<8xf32> to vector<8x1xf32>
    %198 = vector.broadcast %197 : vector<8x1xf32> to vector<8x16xf32>
    %199 = arith.subf %195, %198 : vector<8x16xf32>
    %200 = math.exp %199 : vector<8x16xf32>
    %cst_67 = arith.constant dense<0.000000e+00> : vector<8xf32>
    %201 = vector.multi_reduction <add>, %200, %cst_67 [1] : vector<8x16xf32> to vector<8xf32>
    %202 = vector.shape_cast %201 : vector<8xf32> to vector<8x1xf32>
    %203 = tpu.reciprocal %202 {approx = true} : vector<8x1xf32> -> vector<8x1xf32>
    %204 = vector.broadcast %203 : vector<8x1xf32> to vector<8x16xf32>
    %205 = arith.mulf %200, %204 : vector<8x16xf32>
    %206 = arith.cmpf one, %205, %205 : vector<8x16xf32>
    %cst_68 = arith.constant 0.000000e+00 : f32
    %207 = vector.broadcast %cst_68 : f32 to vector<8x16xf32>
    %208 = arith.select %206, %207, %205 : vector<8x16xi1>, vector<8x16xf32>
    %209 = arith.truncf %208 : vector<8x16xf32> to vector<8x16xbf16>
    %cst_69 = arith.constant dense<0.000000e+00> : vector<8x8xf32>
    %210 = tpu.matmul %209, %191, %cst_69 {dimension_numbers = #tpu.dot_dimension_numbers<[1], [0], [0], [1], [0, 0, 1, 1], [], []>} : vector<8x16xbf16>, vector<16x8xbf16>, vector<8x8xf32> -> vector<8x8xf32>
    %211 = vector.extract_strided_slice %158 {offsets = [0, 16], sizes = [8, 8], strides = [1, 1]} : vector<8x32xf32> to vector<8x8xf32>
    %212 = arith.truncf %211 : vector<8x8xf32> to vector<8x8xbf16>
    %213 = vector.extract_strided_slice %159 {offsets = [0, 16], sizes = [16, 8], strides = [1, 1]} : vector<16x32xf32> to vector<16x8xf32>
    %214 = arith.truncf %213 : vector<16x8xf32> to vector<16x8xbf16>
    %215 = vector.extract_strided_slice %160 {offsets = [0, 16], sizes = [16, 8], strides = [1, 1]} : vector<16x32xf32> to vector<16x8xf32>
    %216 = arith.truncf %215 : vector<16x8xf32> to vector<16x8xbf16>
    %cst_70 = arith.constant dense<0.000000e+00> : vector<8x16xf32>
    %217 = tpu.matmul %212, %214, %cst_70 {dimension_numbers = #tpu.dot_dimension_numbers<[1], [1], [0], [0], [0, 0, 1, 0], [], []>} : vector<8x8xbf16>, vector<16x8xbf16>, vector<8x16xf32> -> vector<8x16xf32>
    %218 = arith.cmpf one, %217, %217 : vector<8x16xf32>
    %cst_71 = arith.constant 0xFF800000 : f32
    %219 = vector.broadcast %cst_71 : f32 to vector<8x16xf32>
    %220 = arith.select %218, %219, %217 : vector<8x16xi1>, vector<8x16xf32>
    %cst_72 = arith.constant dense<0xFF800000> : vector<8xf32>
    %221 = vector.multi_reduction <maximumf>, %220, %cst_72 [1] : vector<8x16xf32> to vector<8xf32>
    %222 = vector.shape_cast %221 : vector<8xf32> to vector<8x1xf32>
    %223 = vector.broadcast %222 : vector<8x1xf32> to vector<8x16xf32>
    %224 = arith.subf %220, %223 : vector<8x16xf32>
    %225 = math.exp %224 : vector<8x16xf32>
    %cst_73 = arith.constant dense<0.000000e+00> : vector<8xf32>
    %226 = vector.multi_reduction <add>, %225, %cst_73 [1] : vector<8x16xf32> to vector<8xf32>
    %227 = vector.shape_cast %226 : vector<8xf32> to vector<8x1xf32>
    %228 = tpu.reciprocal %227 {approx = true} : vector<8x1xf32> -> vector<8x1xf32>
    %229 = vector.broadcast %228 : vector<8x1xf32> to vector<8x16xf32>
    %230 = arith.mulf %225, %229 : vector<8x16xf32>
    %231 = arith.cmpf one, %230, %230 : vector<8x16xf32>
    %cst_74 = arith.constant 0.000000e+00 : f32
    %232 = vector.broadcast %cst_74 : f32 to vector<8x16xf32>
    %233 = arith.select %231, %232, %230 : vector<8x16xi1>, vector<8x16xf32>
    %234 = arith.truncf %233 : vector<8x16xf32> to vector<8x16xbf16>
    %cst_75 = arith.constant dense<0.000000e+00> : vector<8x8xf32>
    %235 = tpu.matmul %234, %216, %cst_75 {dimension_numbers = #tpu.dot_dimension_numbers<[1], [0], [0], [1], [0, 0, 1, 1], [], []>} : vector<8x16xbf16>, vector<16x8xbf16>, vector<8x8xf32> -> vector<8x8xf32>
    %236 = vector.extract_strided_slice %158 {offsets = [0, 24], sizes = [8, 8], strides = [1, 1]} : vector<8x32xf32> to vector<8x8xf32>
    %237 = arith.truncf %236 : vector<8x8xf32> to vector<8x8xbf16>
    %238 = vector.extract_strided_slice %159 {offsets = [0, 24], sizes = [16, 8], strides = [1, 1]} : vector<16x32xf32> to vector<16x8xf32>
    %239 = arith.truncf %238 : vector<16x8xf32> to vector<16x8xbf16>
    %240 = vector.extract_strided_slice %160 {offsets = [0, 24], sizes = [16, 8], strides = [1, 1]} : vector<16x32xf32> to vector<16x8xf32>
    %241 = arith.truncf %240 : vector<16x8xf32> to vector<16x8xbf16>
    %cst_76 = arith.constant dense<0.000000e+00> : vector<8x16xf32>
    %242 = tpu.matmul %237, %239, %cst_76 {dimension_numbers = #tpu.dot_dimension_numbers<[1], [1], [0], [0], [0, 0, 1, 0], [], []>} : vector<8x8xbf16>, vector<16x8xbf16>, vector<8x16xf32> -> vector<8x16xf32>
    %243 = arith.cmpf one, %242, %242 : vector<8x16xf32>
    %cst_77 = arith.constant 0xFF800000 : f32
    %244 = vector.broadcast %cst_77 : f32 to vector<8x16xf32>
    %245 = arith.select %243, %244, %242 : vector<8x16xi1>, vector<8x16xf32>
    %cst_78 = arith.constant dense<0xFF800000> : vector<8xf32>
    %246 = vector.multi_reduction <maximumf>, %245, %cst_78 [1] : vector<8x16xf32> to vector<8xf32>
    %247 = vector.shape_cast %246 : vector<8xf32> to vector<8x1xf32>
    %248 = vector.broadcast %247 : vector<8x1xf32> to vector<8x16xf32>
    %249 = arith.subf %245, %248 : vector<8x16xf32>
    %250 = math.exp %249 : vector<8x16xf32>
    %cst_79 = arith.constant dense<0.000000e+00> : vector<8xf32>
    %251 = vector.multi_reduction <add>, %250, %cst_79 [1] : vector<8x16xf32> to vector<8xf32>
    %252 = vector.shape_cast %251 : vector<8xf32> to vector<8x1xf32>
    %253 = tpu.reciprocal %252 {approx = true} : vector<8x1xf32> -> vector<8x1xf32>
    %254 = vector.broadcast %253 : vector<8x1xf32> to vector<8x16xf32>
    %255 = arith.mulf %250, %254 : vector<8x16xf32>
    %256 = arith.cmpf one, %255, %255 : vector<8x16xf32>
    %cst_80 = arith.constant 0.000000e+00 : f32
    %257 = vector.broadcast %cst_80 : f32 to vector<8x16xf32>
    %258 = arith.select %256, %257, %255 : vector<8x16xi1>, vector<8x16xf32>
    %259 = arith.truncf %258 : vector<8x16xf32> to vector<8x16xbf16>
    %cst_81 = arith.constant dense<0.000000e+00> : vector<8x8xf32>
    %260 = tpu.matmul %259, %241, %cst_81 {dimension_numbers = #tpu.dot_dimension_numbers<[1], [0], [0], [1], [0, 0, 1, 1], [], []>} : vector<8x16xbf16>, vector<16x8xbf16>, vector<8x8xf32> -> vector<8x8xf32>
    %261 = tpu.concatenate %185, %210, %235, %260 in 0 : vector<8x8xf32>, vector<8x8xf32>, vector<8x8xf32>, vector<8x8xf32> -> vector<32x8xf32>
    %c0_82 = arith.constant 0 : index
    %c0_83 = arith.constant 0 : index
    %262 = vector.load %arg10[%c0_82, %c0_83] : memref<32x8xf32, #tpu.memory_space<vmem>>, vector<32x8xf32>
    tpu.vector_store %arg10[%c0_82, %c0_83], %261 {strides = array<i32>} : memref<32x8xf32, #tpu.memory_space<vmem>>, vector<32x8xf32>,
    %c0_84 = arith.constant 0 : index
    %c0_85 = arith.constant 0 : index
    %263 = tpu.strided_load %arg10[%c0_84, %c0_85] {strides = array<i32: 4, 1>} : memref<32x8xf32, #tpu.memory_space<vmem>>, vector<8x8xf32>
    %c1_86 = arith.constant 1 : index
    %c0_87 = arith.constant 0 : index
    %264 = tpu.strided_load %arg10[%c1_86, %c0_87] {strides = array<i32: 4, 1>} : memref<32x8xf32, #tpu.memory_space<vmem>>, vector<8x8xf32>
    %c2_88 = arith.constant 2 : index
    %c0_89 = arith.constant 0 : index
    %265 = tpu.strided_load %arg10[%c2_88, %c0_89] {strides = array<i32: 4, 1>} : memref<32x8xf32, #tpu.memory_space<vmem>>, vector<8x8xf32>
    %c3_90 = arith.constant 3 : index
    %c0_91 = arith.constant 0 : index
    %266 = tpu.strided_load %arg10[%c3_90, %c0_91] {strides = array<i32: 4, 1>} : memref<32x8xf32, #tpu.memory_space<vmem>>, vector<8x8xf32>
    %267 = tpu.concatenate %263, %264, %265, %266 in 1 : vector<8x8xf32>, vector<8x8xf32>, vector<8x8xf32>, vector<8x8xf32> -> vector<8x32xf32>
    %268 = vector.extract_strided_slice %0 {offsets = [1, 0, 0], sizes = [1, 8, 32], strides = [1, 1, 1]} : vector<2x8x32xf32> to vector<1x8x32xf32>
    %269 = vector.shape_cast %268 : vector<1x8x32xf32> to vector<8x32xf32>
    %270 = arith.addf %267, %269 : vector<8x32xf32>
    %cst_92 = arith.constant dense<0.000000e+00> : vector<8xf32>
    %271 = vector.multi_reduction <add>, %270, %cst_92 [1] : vector<8x32xf32> to vector<8xf32>
    %272 = vector.shape_cast %271 : vector<8xf32> to vector<8x1xf32>
    %cst_93 = arith.constant 3.200000e+01 : f32
    %273 = vector.broadcast %cst_93 : f32 to vector<8x1xf32>
    %274 = arith.divf %272, %273 : vector<8x1xf32>
    %275 = vector.broadcast %274 : vector<8x1xf32> to vector<8x32xf32>
    %276 = arith.subf %270, %275 : vector<8x32xf32>
    %277 = arith.mulf %276, %276 : vector<8x32xf32>
    %cst_94 = arith.constant dense<0.000000e+00> : vector<8xf32>
    %278 = vector.multi_reduction <add>, %277, %cst_94 [1] : vector<8x32xf32> to vector<8xf32>
    %279 = vector.shape_cast %278 : vector<8xf32> to vector<8x1xf32>
    %cst_95 = arith.constant 3.200000e+01 : f32
    %280 = vector.broadcast %cst_95 : f32 to vector<8x1xf32>
    %281 = arith.divf %279, %280 : vector<8x1xf32>
    %cst_96 = arith.constant 9.99999974E-6 : f32
    %282 = vector.broadcast %cst_96 : f32 to vector<8x1xf32>
    %283 = arith.addf %281, %282 : vector<8x1xf32>
    %284 = math.rsqrt %283 : vector<8x1xf32>
    %285 = vector.broadcast %284 : vector<8x1xf32> to vector<8x32xf32>
    %286 = arith.mulf %276, %285 : vector<8x32xf32>
    %287 = vector.broadcast %20 : vector<1x32xf32> to vector<8x32xf32>
    %288 = arith.mulf %286, %287 : vector<8x32xf32>
    %289 = vector.broadcast %21 : vector<1x32xf32> to vector<8x32xf32>
    %290 = arith.addf %288, %289 : vector<8x32xf32>
    %c1_97 = arith.constant 1 : index
    %c0_98 = arith.constant 0 : index
    %c0_99 = arith.constant 0 : index
    %291 = vector.load %arg9[%c1_97, %c0_98, %c0_99] : memref<2x8x32xf32, #tpu.memory_space<vmem>>, vector<1x8x32xf32>
    %292 = vector.shape_cast %291 : vector<1x8x32xf32> to vector<8x32xf32>
    %293 = vector.shape_cast %290 : vector<8x32xf32> to vector<1x8x32xf32>
    tpu.vector_store %arg9[%c1_97, %c0_98, %c0_99], %293 {strides = array<i32>} : memref<2x8x32xf32, #tpu.memory_space<vmem>>, vector<1x8x32xf32>,
    return
  }
  func.func @transform_0(%arg0: i32) -> (i32, i32, i32) {
    %c0_i32 = arith.constant 0 : i32
    %c0_i32_0 = arith.constant 0 : i32
    %c0_i32_1 = arith.constant 0 : i32
    return %arg0, %c0_i32, %c0_i32_0 : i32, i32, i32
  }
  func.func @transform_1(%arg0: i32) -> (i32, i32, i32) {
    %c0_i32 = arith.constant 0 : i32
    %c0_i32_0 = arith.constant 0 : i32
    %c0_i32_1 = arith.constant 0 : i32
    return %arg0, %c0_i32, %c0_i32_0 : i32, i32, i32
  }
  func.func @transform_2(%arg0: i32) -> (i32, i32) {
    %c0_i32 = arith.constant 0 : i32
    %c0_i32_0 = arith.constant 0 : i32
    %c0_i32_1 = arith.constant 0 : i32
    return %c0_i32, %c0_i32_0 : i32, i32
  }
  func.func @transform_3(%arg0: i32) -> (i32, i32) {
    %c0_i32 = arith.constant 0 : i32
    %c0_i32_0 = arith.constant 0 : i32
    %c0_i32_1 = arith.constant 0 : i32
    return %c0_i32, %c0_i32_0 : i32, i32
  }
  func.func @transform_4(%arg0: i32) -> (i32, i32) {
    %c0_i32 = arith.constant 0 : i32
    %c0_i32_0 = arith.constant 0 : i32
    %c0_i32_1 = arith.constant 0 : i32
    return %c0_i32, %c0_i32_0 : i32, i32
  }
  func.func @transform_5(%arg0: i32) -> (i32, i32) {
    %c0_i32 = arith.constant 0 : i32
    %c0_i32_0 = arith.constant 0 : i32
    %c0_i32_1 = arith.constant 0 : i32
    return %c0_i32, %c0_i32_0 : i32, i32
  }
  func.func @transform_6(%arg0: i32) -> (i32, i32) {
    %c0_i32 = arith.constant 0 : i32
    %c0_i32_0 = arith.constant 0 : i32
    %c0_i32_1 = arith.constant 0 : i32
    return %c0_i32, %c0_i32_0 : i32, i32
  }
  func.func @transform_7(%arg0: i32) -> (i32, i32) {
    %c0_i32 = arith.constant 0 : i32
    %c0_i32_0 = arith.constant 0 : i32
    %c0_i32_1 = arith.constant 0 : i32
    return %c0_i32, %c0_i32_0 : i32, i32
  }
  func.func @transform_8(%arg0: i32) -> (i32, i32, i32) {
    %c0_i32 = arith.constant 0 : i32
    %c0_i32_0 = arith.constant 0 : i32
    %c0_i32_1 = arith.constant 0 : i32
    return %arg0, %c0_i32, %c0_i32_0 : i32, i32, i32
  }
}

</mosaic_0001>

<bundles_post_ra>
// kernel: cross_attention_forward.1
= control target key start
LH: loop header
LB: loop body
LE: loop exit
PB: predicated region body
PF: predicated region fallthrough
CT: control target
= control target key end

     0   :  { %s1095_s0 = inlined_call_operand.vmem [shape: f32[2,8,32], index: 0, kind: input, shape index: {}]   ;;  %s1096_s1 = inlined_call_operand.vmem [shape: bf16[2,16,32], index: 1, kind: input, shape index: {}]   ;;  %s1097_s2 = inlined_call_operand.vmem [shape: bf16[32,32], index: 2, kind: input, shape index: {}]   ;;  %s1098_s3 = inlined_call_operand.vmem [shape: f32[1,32], index: 3, kind: input, shape index: {}]   ;;  %s1099_s4 = inlined_call_operand.vmem [shape: bf16[32,64], index: 4, kind: input, shape index: {}]   ;;  %s1100_s5 = inlined_call_operand.vmem [shape: f32[1,64], index: 5, kind: input, shape index: {}]   ;;  %s1101_s6 = inlined_call_operand.vmem [shape: f32[1,32], index: 6, kind: input, shape index: {}]   ;;  %s1102_s7 = inlined_call_operand.vmem [shape: f32[1,32], index: 7, kind: input, shape index: {}]   ;;  %s1103_s8 = inlined_call_operand.hbm [shape: f32[2,8,32], index: 8, kind: output, shape index: {}]  }
   0x1   :  { %v793_v0 = vld [vmem:[%s1099_s4 + $0x8] sm:$0xff]  ;;  %v792_v1 = vld [vmem:[%s1099_s4] sm:$0xff] }
   0x2   :  { %v791_v2 = vld [vmem:[%s1097_s2 + $0x8] sm:$0xff]  ;;  %v790_v3 = vld [vmem:[%s1097_s2] sm:$0xff]  ;;  %118 = vmatpush.bf16.msra.mxu1 %v793_v0 }
   0x3   :  { %v948_v4 = vld [vmem:[%s1095_s0] sm:$0xff]  ;;  %v953_v5 = vld [vmem:[%s1095_s0 + $0x8] sm:$0xff]  ;;  %68 = vmatpush.bf16.msra.mxu0 %v791_v2 }
   0x4   :  { %13 = vsyncpa [#allocation4], 0  ;;  %v788_v6 = vld [vmem:[%s1096_s1] sm:$0xff]  ;;  %vm58_vm0 = vcmask 261120   ;;  %v37_v7 = vpack.c.bf16 %v953_v5, %v948_v4  ;;  %v789_v8 = vld [vmem:[%s1096_s1 + $0x8] sm:$0xff]  ;;  %s875_s22 = smov 120  }
   0x5   :  { %v808_v9 = vld [vmem:[%s1098_s3] ss:$0 sm:$0xff]  ;;  %vm144_vm2 = vcmask 64512   ;;  %s876_s1 = smov 96   ;;  %s877_s3 = smov 112   ;;  %vm166_vm6 = vcmask 130048  }
   0x6   :  { %119 = vmatpush.bf16.msra.mxu1 %v792_v1  ;;  %v807_v11 = vld [vmem:[%s1100_s5] ss:$0 sm:$0xff]  ;;  %s878_s5 = smov 104   ;;  %s879_s23 = smov 88  }
   0x7   :  { %69 = vmatpush.bf16.msra.mxu0 %v790_v3  ;;  %s880_s24 = smov 80   ;;  %s881_s25 = smov 72  }
   0x8   :  { %s882_s26 = smov 24   ;;  %s883_s27 = smov 16  }
   0x9   :  { %770 = vmatmul.msk.bf16.vlgmr.msra.gmra.mxu1 %vm58_vm0, %v788_v6  ;;  %s884_s28 = smov 8   ;;  %s733_s13 = sshll.u32 %s1103_s8, 4  ;;  %s734_s13 = int_to_ptr.hbm [resolvable:$true] %s733_s13 }
   0xa   :  { %753 = vmatmul.msk.bf16.vlgmr.msra.gmra.mxu0 %vm58_vm0, %v37_v7  ;;  %s887_s14 = smov 128  }
  0x19   :  { %771 = vmatmul.msk.bf16.gmra.mxu1 %vm58_vm0, %v789_v8 }
  0x86   :  { %v121_v10 = vpop.f32.mrf.mxu1 }
  0x87   :  { %v71_v12 = vpop.f32.mrf.mxu0  ;;  %v122_v15 = vadd.f32 %v807_v11, %v121_v10 }
  0x88   :  { %v72_v13 = vadd.f32 %v808_v9, %v71_v12 }
  0x89   :  { %vm131_vm1 = vcmp.ne.f32.partialorder %v122_v15, %v122_v15 }
  0x8a   :  { %v141_v14 = vpack.c.bf16 %v72_v13, %v72_v13  ;;  %v135_v19 = vsel %vm131_vm1, 0.0, %v122_v15 }
  0x8c   :  { %202 = vrot.lane.b32.xlu2 %v141_v14, %s875_s22 }
  0x8e   :  { %v123_v16 = vpop.f32.mrf.mxu1 }
  0x8f   :  { %v124_v17 = vadd.f32 %v807_v11, %v123_v16  ;;  %v73_v42 = vpop.f32.mrf.mxu0 }
  0x90   :  { %v74_v43 = vadd.f32 %v808_v9, %v73_v42 }
  0x91   :  { %vm132_vm3 = vcmp.ne.f32.partialorder %v124_v17, %v124_v17  ;;  %v142_v18 = vpack.c.bf16 %v124_v17, %v122_v15 }
  0x92   :  { %v136_v20 = vsel %vm132_vm3, 0.0, %v124_v17  ;;  %v998_v44 = vpack.c.bf16 %v74_v43, %v74_v43 }
  0x93   :  { %v973_v21 = vpack.c.bf16 %v136_v20, %v135_v19  ;;  %v149_v22 = vsel %vm144_vm2, %v142_v18, 0 }
  0x94   :  { %158 = vmatpush.bf16.xpose.msra.mxu2 %v149_v22 }
  0x95   :  { %182 = vrot.lane.b32.xlu1 %v973_v21, %s876_s1 }
  0x96   :  { %v126_v23 = vpop.f32.mrf.mxu1 }
  0x97   :  { %v127_v24 = vadd.f32 %v807_v11, %v126_v23 }
  0x99   :  { %vm133_vm4 = vcmp.ne.f32.partialorder %v127_v24, %v127_v24 }
  0x9a   :  { %v137_v27 = vsel %vm133_vm4, 0.0, %v127_v24 }
  0x9b   :  { %772 = vmatmul.msk.bf16.vlgmr.msra.gmra.mxu2 %vm144_vm2, %v141_v14 }
  0x9d   :  { %205 = vrot.lane.b32.xlu1 %v142_v18, %s875_s22 }
  0x9e   :  { %v128_v25 = vpop.f32.mrf.mxu1 }
  0x9f   :  { %v129_v26 = vadd.f32 %v807_v11, %v128_v25 }
  0xa1   :  { %vm134_vm5 = vcmp.ne.f32.partialorder %v129_v26, %v129_v26  ;;  %v984_v28 = vpack.c.bf16 %v129_v26, %v127_v24 }
  0xa2   :  { %v138_v30 = vsel %vm134_vm5, 0.0, %v129_v26 }
  0xa3   :  { %v986_v31 = vpack.c.bf16 %v138_v30, %v137_v27  ;;  %v450_v35 = vsel %vm144_vm2, %v984_v28, 0 }
  0xa5   :  { %263 = vrot.lane.b32.xlu1 %v142_v18, %s877_s3 }
  0xad   :  { %261 = vrot.lane.b32.xlu1 %v141_v14, %s877_s3 }
  0xb5   :  { %321 = vrot.lane.b32.xlu1 %v142_v18, %s878_s5 }
  0xbd   :  { %319 = vrot.lane.b32.xlu1 %v141_v14, %s878_s5 }
  0xc5   :  { %563 = vrot.lane.b32.xlu1 %v984_v28, %s877_s3 }
  0xcd   :  { %621 = vrot.lane.b32.xlu1 %v984_v28, %s878_s5 }
  0xe6   :  { %v203_v7 = vpop.permute.xlu2 %202 }
 0x107   :  { %v183_v29 = vpop.permute.xlu1 %182 }
 0x108   :  { %195 = vmatpush.bf16.msra.mxu3 %v183_v29 }
 0x10f   :  { %v206_v32 = vpop.permute.xlu1 %205 }
 0x110   :  { %v211_v33 = vsel %vm144_vm2, %v206_v32, 0 }
 0x111   :  { %220 = vmatpush.bf16.xpose.msrb.mxu3 %v211_v33 }
 0x117   :  { %v264_v34 = vpop.permute.xlu1 %263 }
 0x118   :  { %v269_v36 = vsel %vm144_vm2, %v264_v34, 0 }
 0x119   :  { %278 = vmatpush.bf16.xpose.msrb.mxu2 %v269_v36 }
 0x11e   :  { %v160_v37 = vpop.f32.mrf.mxu2 }
 0x11f   :  { %v262_v38 = vpop.permute.xlu1 %261  ;;  %vm164_vm7 = vcmp.ne.f32.partialorder %v160_v37, %v160_v37 }
 0x120   :  { %776 = vmatmul.msk.bf16.vlgmr.msrb.gmra.mxu2 %vm144_vm2, %v262_v38  ;;  %v165_v39 = vsel %vm164_vm7, -inf, %v160_v37 }
 0x121   :  { %459 = vmatpush.bf16.xpose.msra.mxu2 %v450_v35  ;;  %v167_v40 = vsel %vm166_vm6, %v165_v39, -inf }
 0x122   :  { %168 = vmax.xlane.f32.xlu0 %v167_v40 }
 0x126   :  { %v162_v41 = vpop.f32.mrf.mxu2 }
 0x127   :  { %v322_v45 = vpop.permute.xlu1 %321 }
 0x128   :  { %v327_v3 = vsel %vm144_vm2, %v322_v45, 0 }
 0x12f   :  { %v1002_v48 = vpop.permute.xlu1 %319 }
 0x130   :  { %780 = vmatmul.msk.bf16.vlgmr.msra.gmra.mxu2 %vm144_vm2, %v998_v44 }
 0x137   :  { %v564_v51 = vpop.permute.xlu1 %563 }
 0x138   :  { %v569_v53 = vsel %vm144_vm2, %v564_v51, 0 }
 0x139   :  { %578 = vmatpush.bf16.xpose.msrb.mxu2 %v569_v53 }
 0x13f   :  { %v1011_v63 = vpop.permute.xlu1 %621 }
 0x195   :  { %v169_v46 = vpop.xlane.xlu0 %168 }
 0x196   :  { %v170_v47 = vsub.f32 %v165_v39, %v169_v46 }
 0x198   :  { %v171_v49 = vmul.f32 1.442695, %v170_v47  ;;  %v627_v47 = vsel %vm144_vm2, %v1011_v63, 0 }
 0x19a   :  { %811 = vpow2.f32 %v171_v49 }
 0x1a0   :  { %v812_v50 = vpop.eup %811 }
 0x1a1   :  { %v173_v52 = vsel %vm166_vm6, %v812_v50, 0.0 }
 0x1a2   :  { %174 = vadd.xlane.f32.xlu0 %v173_v52 }
 0x1a3   :  { %v280_v54 = vpop.f32.mrf.mxu2 }
 0x1a4   :  { %vm284_vm8 = vcmp.ne.f32.partialorder %v280_v54, %v280_v54 }
 0x1a5   :  { %v285_v55 = vsel %vm284_vm8, -inf, %v280_v54 }
 0x1a6   :  { %v286_v56 = vsel %vm166_vm6, %v285_v55, -inf }
 0x1a7   :  { %287 = vmax.xlane.f32.xlu1 %v286_v56 }
 0x1ab   :  { %v282_v57 = vpop.f32.mrf.mxu2 }
 0x1b3   :  { %v461_v58 = vpop.f32.mrf.mxu2 }
 0x1b4   :  { %vm465_vm11 = vcmp.ne.f32.partialorder %v461_v58, %v461_v58 }
 0x1b5   :  { %v466_v17 = vsel %vm465_vm11, -inf, %v461_v58 }
 0x1b6   :  { %242 = vrot.lane.b32.xlu0 %v973_v21, %s879_s23  ;;  %v467_v18 = vsel %vm166_vm6, %v466_v17, -inf }
 0x1bb   :  { %v463_v59 = vpop.f32.mrf.mxu2 }
 0x1c0   :  { %300 = vrot.lane.b32.xlu1 %v973_v21, %s880_s24 }
 0x215   :  { %v175_v60 = vpop.xlane.xlu0 %174 }
 0x216   :  { %813 = vrcp.f32 %v175_v60 }
 0x21a   :  { %v288_v6 = vpop.xlane.xlu1 %287 }
 0x21b   :  { %v289_v15 = vsub.f32 %v285_v55, %v288_v6 }
 0x21c   :  { %v814_v61 = vpop.eup %813 }
 0x21d   :  { %v177_v62 = vmul.f32 %v814_v61, %v812_v50  ;;  %v290_v16 = vmul.f32 1.442695, %v289_v15 }
 0x21f   :  { %vm178_vm9 = vcmp.ne.f32.partialorder %v177_v62, %v177_v62  ;;  %815 = vpow2.f32 %v290_v16 }
 0x220   :  { %v179_v0 = vsel %vm178_vm9, 0.0, %v177_v62 }
 0x221   :  { %v180_v1 = vpack.c.bf16 %v179_v0, %v179_v0 }
 0x223   :  { %773 = vmatmul.msk.bf16.vlgmr.msra.gmra.mxu3 %vm166_vm6, %v180_v1 }
 0x225   :  { %v816_v19 = vpop.eup %815 }
 0x226   :  { %v292_v20 = vsel %vm166_vm6, %v816_v19, 0.0 }
 0x228   :  { %v243_v2 = vpop.permute.xlu0 %242 }
 0x229   :  { %255 = vmatpush.bf16.msrb.mxu0 %v243_v2 }
 0x22d   :  { %336 = vmatpush.bf16.xpose.msra.mxu0 %v327_v3 }
 0x232   :  { %v301_v8 = vpop.permute.xlu1 %300 }
 0x233   :  { %774 = vmatmul.msk.bf16.vlgmr.msrb.gmra.mxu3 %vm144_vm2, %v203_v7 }
 0x234   :  { %313 = vmatpush.bf16.msra.mxu3 %v301_v8 }
 0x2a6   :  { %v197_v9 = vpop.f32.mrf.mxu3 }
 0x2a7   :  { %377 = vst.msk [vmem:[#allocation2] sm:$0xff] %vm144_vm2, %v197_v9 }
 0x2ae   :  { %v199_v10 = vpop.f32.mrf.mxu3 }
 0x2b6   :  { %v222_v11 = vpop.f32.mrf.mxu3 }
 0x2b7   :  { %vm226_vm10 = vcmp.ne.f32.partialorder %v222_v11, %v222_v11 }
 0x2b8   :  { %v227_v12 = vsel %vm226_vm10, -inf, %v222_v11  ;;  %vm402_vm10 = vcmask 195584  }
 0x2b9   :  { %v228_v13 = vsel %vm166_vm6, %v227_v12, -inf }
 0x2ba   :  { %229 = vmax.xlane.f32.xlu2 %v228_v13 }
 0x2be   :  { %v224_v14 = vpop.f32.mrf.mxu3 }
 0x2d2   :  { %502 = vrot.lane.b32.xlu2 %v998_v44, %s875_s22 }
 0x2fb   :  { %468 = vmax.xlane.f32.xlu2 %v467_v18 }
 0x303   :  { %293 = vadd.xlane.f32.xlu2 %v292_v20 }
 0x32d   :  { %v230_v22 = vpop.xlane.xlu2 %229 }
 0x32e   :  { %v231_v23 = vsub.f32 %v227_v12, %v230_v22 }
 0x330   :  { %v232_v24 = vmul.f32 1.442695, %v231_v23 }
 0x332   :  { %817 = vpow2.f32 %v232_v24 }
 0x335   :  { %v503_v27 = vpop.permute.xlu2 %502 }
 0x338   :  { %v818_v25 = vpop.eup %817 }
 0x339   :  { %v234_v26 = vsel %vm166_vm6, %v818_v25, 0.0 }
 0x33a   :  { %235 = vadd.xlane.f32.xlu0 %v234_v26 }
 0x34e   :  { %505 = vrot.lane.b32.xlu0 %v984_v28, %s875_s22 }
 0x356   :  { %561 = vrot.lane.b32.xlu0 %v998_v44, %s877_s3 }
 0x35e   :  { %619 = vrot.lane.b32.xlu0 %v998_v44, %s878_s5 }
 0x36e   :  { %v469_v29 = vpop.xlane.xlu2 %468 }
 0x36f   :  { %v470_v30 = vsub.f32 %v466_v17, %v469_v29 }
 0x371   :  { %v471_v32 = vmul.f32 1.442695, %v470_v30 }
 0x373   :  { %819 = vpow2.f32 %v471_v32 }
 0x376   :  { %v294_v33 = vpop.xlane.xlu2 %293 }
 0x377   :  { %821 = vrcp.f32 %v294_v33 }
 0x379   :  { %v820_v34 = vpop.eup %819 }
 0x37a   :  { %v473_v35 = vsel %vm166_vm6, %v820_v34, 0.0 }
 0x37b   :  { %474 = vadd.xlane.f32.xlu2 %v473_v35 }
 0x37d   :  { %v822_v36 = vpop.eup %821 }
 0x37e   :  { %v296_v37 = vmul.f32 %v822_v36, %v816_v19 }
 0x380   :  { %vm297_vm12 = vcmp.ne.f32.partialorder %v296_v37, %v296_v37 }
 0x381   :  { %v298_v28 = vsel %vm297_vm12, 0.0, %v296_v37 }
 0x382   :  { %v299_v38 = vpack.c.bf16 %v298_v28, %v298_v28 }
 0x384   :  { %777 = vmatmul.msk.bf16.vlgmr.msra.gmra.mxu3 %vm166_vm6, %v299_v38 }
 0x393   :  { %482 = vrot.lane.b32.xlu2 %v986_v31, %s876_s1 }
 0x3ad   :  { %v236_v39 = vpop.xlane.xlu0 %235 }
 0x3ae   :  { %823 = vrcp.f32 %v236_v39 }
 0x3b4   :  { %v824_v40 = vpop.eup %823 }
 0x3b5   :  { %v238_v41 = vmul.f32 %v824_v40, %v818_v25 }
 0x3b7   :  { %vm239_vm13 = vcmp.ne.f32.partialorder %v238_v41, %v238_v41 }
 0x3b8   :  { %v240_v42 = vsel %vm239_vm13, 0.0, %v238_v41 }
 0x3b9   :  { %v241_v43 = vpack.c.bf16 %v240_v42, %v240_v42 }
 0x3bb   :  { %775 = vmatmul.msk.bf16.vlgmr.msrb.gmra.mxu0 %vm166_vm6, %v241_v43 }
 0x3c0   :  { %v506_v44 = vpop.permute.xlu0 %505 }
 0x3c1   :  { %v511_v45 = vsel %vm144_vm2, %v506_v44, 0 }
 0x3c2   :  { %520 = vmatpush.bf16.xpose.msrb.mxu0 %v511_v45 }
 0x3c8   :  { %v562_v46 = vpop.permute.xlu0 %561 }
 0x3c9   :  { %784 = vmatmul.msk.bf16.vlgmr.msrb.gmra.mxu2 %vm144_vm2, %v562_v46 }
 0x3cb   :  { %778 = vmatmul.msk.bf16.vlgmr.msra.gmra.mxu0 %vm144_vm2, %v1002_v48 }
 0x3cc   :  { %636 = vmatpush.bf16.xpose.msra.mxu0 %v627_v47 }
 0x3d0   :  { %v620_v49 = vpop.permute.xlu0 %619 }
 0x3db   :  { %782 = vmatmul.msk.bf16.vlgmr.msrb.gmra.mxu0 %vm144_vm2, %v503_v27 }
 0x3eb   :  { %786 = vmatmul.msk.bf16.vlgmr.msra.gmra.mxu0 %vm144_vm2, %v620_v49 }
 0x3ee   :  { %v475_v50 = vpop.xlane.xlu2 %474 }
 0x3ef   :  { %825 = vrcp.f32 %v475_v50 }
 0x3f5   :  { %v826_v51 = vpop.eup %825 }
 0x3f6   :  { %v477_v52 = vmul.f32 %v826_v51, %v820_v34  ;;  %v483_v53 = vpop.permute.xlu2 %482 }
 0x3f7   :  { %495 = vmatpush.bf16.msrb.mxu3 %v483_v53 }
 0x3f8   :  { %vm478_vm14 = vcmp.ne.f32.partialorder %v477_v52, %v477_v52 }
 0x3f9   :  { %v479_v54 = vsel %vm478_vm14, 0.0, %v477_v52 }
 0x3fa   :  { %v480_v55 = vpack.c.bf16 %v479_v54, %v479_v54 }
 0x3fc   :  { %781 = vmatmul.msk.bf16.vlgmr.msrb.gmra.mxu3 %vm166_vm6, %v480_v55 }
 0x407   :  { %v315_v56 = vpop.f32.mrf.mxu3 }
 0x408   :  { %379 = vst.msk [vmem:[#allocation2 + $0x10] sm:$0xff] %vm144_vm2, %v315_v56 }
 0x40f   :  { %v317_v48 = vpop.f32.mrf.mxu3 }
 0x438   :  { %v257_v57 = vpop.f32.mrf.mxu0 }
 0x439   :  { %378 = vst.msk [vmem:[#allocation2 + $0x8] sm:$0xff] %vm144_vm2, %v257_v57 }
 0x440   :  { %v259_v58 = vpop.f32.mrf.mxu0 }
 0x448   :  { %v338_v59 = vpop.f32.mrf.mxu0 }
 0x449   :  { %vm342_vm15 = vcmp.ne.f32.partialorder %v338_v59, %v338_v59 }
 0x44a   :  { %v343_v60 = vsel %vm342_vm15, -inf, %v338_v59 }
 0x44b   :  { %v344_v61 = vsel %vm166_vm6, %v343_v60, -inf }
 0x44c   :  { %345 = vmax.xlane.f32.xlu0 %v344_v61  ;;  %v580_v62 = vpop.f32.mrf.mxu2 }
 0x44d   :  { %vm584_vm1 = vcmp.ne.f32.partialorder %v580_v62, %v580_v62 }
 0x44e   :  { %v585_v0 = vsel %vm584_vm1, -inf, %v580_v62 }
 0x44f   :  { %v586_v1 = vsel %vm166_vm6, %v585_v0, -inf }
 0x450   :  { %v340_v63 = vpop.f32.mrf.mxu0 }
 0x454   :  { %587 = vmax.xlane.f32.xlu0 %v586_v1  ;;  %v582_v2 = vpop.f32.mrf.mxu2 }
 0x458   :  { %v522_v3 = vpop.f32.mrf.mxu0 }
 0x459   :  { %vm526_vm3 = vcmp.ne.f32.partialorder %v522_v3, %v522_v3 }
 0x45a   :  { %v527_v6 = vsel %vm526_vm3, -inf, %v522_v3 }
 0x45b   :  { %v528_v7 = vsel %vm166_vm6, %v527_v6, -inf }
 0x45c   :  { %529 = vmax.xlane.f32.xlu1 %v528_v7 }
 0x460   :  { %v524_v8 = vpop.f32.mrf.mxu0 }
 0x468   :  { %v638_v9 = vpop.f32.mrf.mxu0 }
 0x469   :  { %vm642_vm4 = vcmp.ne.f32.partialorder %v638_v9, %v638_v9 }
 0x46a   :  { %v643_v10 = vsel %vm642_vm4, -inf, %v638_v9 }
 0x46b   :  { %v644_v11 = vsel %vm166_vm6, %v643_v10, -inf }
 0x46c   :  { %645 = vmax.xlane.f32.xlu1 %v644_v11 }
 0x470   :  { %v640_v12 = vpop.f32.mrf.mxu0 }
 0x47f   :  { %v1049_v13 = vpop.f32.mrf.mxu3 }
 0x485   :  { %542 = vrot.lane.b32.xlu1 %v986_v31, %s879_s23 }
 0x487   :  { %v499_v14 = vpop.f32.mrf.mxu3 }
 0x4bf   :  { %v346_v15 = vpop.xlane.xlu0 %345 }
 0x4c0   :  { %v347_v16 = vsub.f32 %v343_v60, %v346_v15 }
 0x4c2   :  { %v348_v17 = vmul.f32 1.442695, %v347_v16 }
 0x4c4   :  { %827 = vpow2.f32 %v348_v17 }
 0x4c7   :  { %v588_v33 = vpop.xlane.xlu0 %587 }
 0x4c8   :  { %v589_v34 = vsub.f32 %v585_v0, %v588_v33 }
 0x4ca   :  { %v828_v18 = vpop.eup %827  ;;  %v590_v35 = vmul.f32 1.442695, %v589_v34 }
 0x4cb   :  { %v350_v19 = vsel %vm166_vm6, %v828_v18, 0.0 }
 0x4cc   :  { %351 = vadd.xlane.f32.xlu0 %v350_v19 }
 0x4cf   :  { %v530_v20 = vpop.xlane.xlu1 %529 }
 0x4d0   :  { %v531_v22 = vsub.f32 %v527_v6, %v530_v20 }
 0x4d2   :  { %v532_v23 = vmul.f32 1.442695, %v531_v22 }
 0x4d4   :  { %829 = vpow2.f32 %v532_v23 }
 0x4da   :  { %v830_v24 = vpop.eup %829 }
 0x4db   :  { %v534_v25 = vsel %vm166_vm6, %v830_v24, 0.0 }
 0x4dc   :  { %535 = vadd.xlane.f32.xlu2 %v534_v25 }
 0x4df   :  { %v646_v26 = vpop.xlane.xlu1 %645 }
 0x4e0   :  { %v647_v27 = vsub.f32 %v643_v10, %v646_v26  ;;  %358 = vrot.lane.b32.xlu0 %v973_v21, %s881_s25 }
 0x4e2   :  { %v648_v29 = vmul.f32 1.442695, %v647_v27 }
 0x4e4   :  { %831 = vpow2.f32 %v648_v29 }
 0x4e5   :  { %833 = vpow2.f32 %v590_v35 }
 0x4ea   :  { %v832_v30 = vpop.eup %831 }
 0x4eb   :  { %v650_v32 = vsel %vm166_vm6, %v832_v30, 0.0  ;;  %v834_v36 = vpop.eup %833 }
 0x4ec   :  { %651 = vadd.xlane.f32.xlu1 %v650_v32  ;;  %v592_v37 = vsel %vm166_vm6, %v834_v36, 0.0  ;;  %v885_v32 = vmov 32.0  }
 0x4f4   :  { %600 = vrot.lane.b32.xlu2 %v986_v31, %s880_s24 }
 0x4f7   :  { %v543_v42 = vpop.permute.xlu1 %542 }
 0x4fc   :  { %658 = vrot.lane.b32.xlu2 %v986_v31, %s881_s25 }
 0x50a   :  { %593 = vadd.xlane.f32.xlu0 %v592_v37 }
 0x53f   :  { %v352_v21 = vpop.xlane.xlu0 %351 }
 0x540   :  { %835 = vrcp.f32 %v352_v21 }
 0x546   :  { %v836_v28 = vpop.eup %835 }
 0x547   :  { %v354_v38 = vmul.f32 %v836_v28, %v828_v18 }
 0x549   :  { %vm355_vm5 = vcmp.ne.f32.partialorder %v354_v38, %v354_v38 }
 0x54a   :  { %v356_v40 = vsel %vm355_vm5, 0.0, %v354_v38 }
 0x54b   :  { %v357_v43 = vpack.c.bf16 %v356_v40, %v356_v40 }
 0x54f   :  { %v536_v39 = vpop.xlane.xlu2 %535 }
 0x550   :  { %837 = vrcp.f32 %v536_v39 }
 0x552   :  { %v359_v41 = vpop.permute.xlu0 %358 }
 0x553   :  { %371 = vmatpush.bf16.msrb.mxu1 %v359_v41 }
 0x556   :  { %779 = vmatmul.msk.bf16.vlgmr.msrb.gmra.mxu1 %vm166_vm6, %v357_v43  ;;  %v838_v31 = vpop.eup %837 }
 0x557   :  { %555 = vmatpush.bf16.msra.mxu1 %v543_v42  ;;  %v601_v44 = vpop.permute.xlu2 %600  ;;  %v538_v45 = vmul.f32 %v838_v31, %v830_v24 }
 0x558   :  { %613 = vmatpush.bf16.msra.mxu3 %v601_v44 }
 0x559   :  { %vm539_vm7 = vcmp.ne.f32.partialorder %v538_v45, %v538_v45 }
 0x55a   :  { %v540_v49 = vsel %vm539_vm7, 0.0, %v538_v45 }
 0x55b   :  { %v541_v50 = vpack.c.bf16 %v540_v49, %v540_v49 }
 0x55f   :  { %v652_v46 = vpop.xlane.xlu1 %651  ;;  %v659_v47 = vpop.permute.xlu2 %658 }
 0x560   :  { %671 = vmatpush.bf16.msrb.mxu1 %v659_v47  ;;  %839 = vrcp.f32 %v652_v46 }
 0x566   :  { %783 = vmatmul.msk.bf16.vlgmr.msra.gmra.mxu1 %vm166_vm6, %v541_v50  ;;  %v840_v51 = vpop.eup %839 }
 0x567   :  { %v654_v52 = vmul.f32 %v840_v51, %v832_v30 }
 0x569   :  { %vm655_vm8 = vcmp.ne.f32.partialorder %v654_v52, %v654_v52 }
 0x56a   :  { %v656_v53 = vsel %vm655_vm8, 0.0, %v654_v52 }
 0x56b   :  { %v657_v54 = vpack.c.bf16 %v656_v53, %v656_v53 }
 0x576   :  { %787 = vmatmul.msk.bf16.vlgmr.msrb.gmra.mxu1 %vm166_vm6, %v657_v54  ;;  %v809_v54 = vld [vmem:[%s1101_s6] ss:$0 sm:$0xff]  ;;  %s886_s6 = smov [#allocation3]  }
 0x57d   :  { %v594_v55 = vpop.xlane.xlu0 %593 }
 0x57e   :  { %841 = vrcp.f32 %v594_v55 }
 0x57f   :  { %843 = vrcp.f32 %v885_v32 }
 0x584   :  { %v842_v56 = vpop.eup %841 }
 0x585   :  { %v596_v48 = vmul.f32 %v842_v56, %v834_v36 }
 0x587   :  { %vm597_vm9 = vcmp.ne.f32.partialorder %v596_v48, %v596_v48 }
 0x588   :  { %v598_v57 = vsel %vm597_vm9, 0.0, %v596_v48  ;;  %v810_v48 = vld [vmem:[%s1102_s7] ss:$0 sm:$0xff]  ;;  %s731_s7 = sshll.u32 %s886_s6, 4  ;;  %s732_s7 = int_to_ptr.vmem [resolvable:$true] %s731_s7 }
 0x589   :  { %v599_v58 = vpack.c.bf16 %v598_v57, %v598_v57 }
 0x58b   :  { %785 = vmatmul.msk.bf16.vlgmr.msra.gmra.mxu3 %vm166_vm6, %v599_v58 }
 0x5d3   :  { %v373_v59 = vpop.f32.mrf.mxu1 }
 0x5d4   :  { %380 = vst.msk [vmem:[#allocation2 + $0x18] sm:$0xff] %vm144_vm2, %v373_v59 }
 0x5db   :  { %v375_v60 = vpop.f32.mrf.mxu1  ;;  %v387_v61 = vld [vmem:[#allocation2 + $0x3] ss:$4 sm:$0xff]  ;;  %v385_v62 = vld [vmem:[#allocation2 + $0x2] ss:$4 sm:$0xff]  ;;  %v383_v63 = vld [vmem:[#allocation2 + $0x1] ss:$4 sm:$0xff] }
 0x5dc   :  { %397 = vrot.lane.b32.xlu1 %v387_v61, %s882_s26  ;;  %393 = vrot.lane.b32.xlu0 %v385_v62, %s883_s27  ;;  %v381_v0 = vld [vmem:[#allocation2] ss:$4 sm:$0xff] }
 0x5dd   :  { %389 = vrot.lane.b32.xlu2 %v383_v63, %s884_s28  ;;  %677 = vst.msk [vmem:[#allocation2] sm:$0xff] %vm144_vm2, %v1049_v13 }
 0x5e3   :  { %v557_v1 = vpop.f32.mrf.mxu1 }
 0x5e4   :  { %678 = vst.msk [vmem:[#allocation2 + $0x8] sm:$0xff] %vm144_vm2, %v557_v1 }
 0x5eb   :  { %v559_v2 = vpop.f32.mrf.mxu1 }
 0x5f3   :  { %v673_v3 = vpop.f32.mrf.mxu1 }
 0x5f4   :  { %680 = vst.msk [vmem:[#allocation2 + $0x18] sm:$0xff] %vm144_vm2, %v673_v3 }
 0x5fb   :  { %v675_v6 = vpop.f32.mrf.mxu1 }
 0x60e   :  { %v615_v7 = vpop.f32.mrf.mxu3 }
 0x60f   :  { %679 = vst.msk [vmem:[#allocation2 + $0x10] sm:$0xff] %vm144_vm2, %v615_v7 }
 0x616   :  { %v617_v8 = vpop.f32.mrf.mxu3  ;;  %v682_v9 = vld [vmem:[#allocation2 + $0x1] ss:$4 sm:$0xff]  ;;  %v683_v10 = vld [vmem:[#allocation2 + $0x2] ss:$4 sm:$0xff]  ;;  %v684_v11 = vld [vmem:[#allocation2 + $0x3] ss:$4 sm:$0xff] }
 0x617   :  { %686 = vrot.lane.b32.xlu2 %v682_v9, %s884_s28  ;;  %v681_v23 = vld [vmem:[#allocation2] ss:$4 sm:$0xff] }
 0x61f   :  { %690 = vrot.lane.b32.xlu2 %v683_v10, %s883_s27 }
 0x627   :  { %694 = vrot.lane.b32.xlu2 %v684_v11, %s882_s26 }
 0x637   :  { %v390_v12 = vpop.permute.xlu2 %389 }
 0x638   :  { %v400_v13 = vsel %vm144_vm2, %v381_v0, %v390_v12 }
 0x64e   :  { %v398_v14 = vpop.permute.xlu1 %397  ;;  %v394_v15 = vpop.permute.xlu0 %393 }
 0x64f   :  { %v401_v16 = vsel %vm166_vm6, %v400_v13, %v394_v15 }
 0x650   :  { %v403_v17 = vsel %vm402_vm10, %v401_v16, %v398_v14 }
 0x651   :  { %v404_v18 = vadd.f32 %v403_v17, %v948_v4  ;;  %v844_v4 = vpop.eup %843 }
 0x652   :  { %v409_v33 = vmul.f32 32.0, %v844_v4  ;;  %vm413_vm11 = vweird.f32 %v844_v4 }
 0x653   :  { %v405_v19 = vsel %vm58_vm0, %v404_v18, 0.0 }
 0x654   :  { %406 = vadd.xlane.f32.xlu0 %v405_v19  ;;  %v410_v34 = vsub.f32 1.0, %v409_v33 }
 0x656   :  { %v411_v35 = vmul.f32 %v844_v4, %v410_v34 }
 0x658   :  { %v412_v36 = vadd.f32 %v844_v4, %v411_v35 }
 0x65a   :  { %v414_v37 = vsel %vm413_vm11, %v844_v4, %v412_v36 }
 0x671   :  { %v687_v20 = vpop.permute.xlu2 %686 }
 0x672   :  { %v697_v24 = vsel %vm144_vm2, %v681_v23, %v687_v20 }
 0x679   :  { %v691_v22 = vpop.permute.xlu2 %690 }
 0x67a   :  { %v698_v25 = vsel %vm166_vm6, %v697_v24, %v691_v22 }
 0x681   :  { %v695_v26 = vpop.permute.xlu2 %694 }
 0x682   :  { %v699_v27 = vsel %vm402_vm10, %v698_v25, %v695_v26 }
 0x683   :  { %v700_v29 = vadd.f32 %v699_v27, %v953_v5 }
 0x685   :  { %v701_v30 = vsel %vm58_vm0, %v700_v29, 0.0 }
 0x686   :  { %702 = vadd.xlane.f32.xlu2 %v701_v30 }
 0x6c7   :  { %v407_v21 = vpop.xlane.xlu0 %406 }
 0x6c8   :  { %v415_v28 = vmul.f32 %v414_v37, %v407_v21 }
 0x6ca   :  { %v416_v38 = vsub.f32 %v404_v18, %v415_v28 }
 0x6cc   :  { %v417_v39 = vmul.f32 %v416_v38, %v416_v38 }
 0x6ce   :  { %v418_v40 = vsel %vm58_vm0, %v417_v39, 0.0 }
 0x6cf   :  { %419 = vadd.xlane.f32.xlu1 %v418_v40 }
 0x6f9   :  { %v703_v5 = vpop.xlane.xlu2 %702 }
 0x6fa   :  { %v704_v41 = vmul.f32 %v703_v5, %v414_v37 }
 0x6fc   :  { %v705_v42 = vsub.f32 %v700_v29, %v704_v41 }
 0x6fe   :  { %v706_v43 = vmul.f32 %v705_v42, %v705_v42 }
 0x700   :  { %v707_v31 = vsel %vm58_vm0, %v706_v43, 0.0 }
 0x701   :  { %708 = vadd.xlane.f32.xlu0 %v707_v31 }
 0x742   :  { %v420_v44 = vpop.xlane.xlu1 %419 }
 0x743   :  { %v421_v45 = vmul.f32 %v420_v44, %v414_v37 }
 0x745   :  { %v422_v46 = vadd.f32 1e-05, %v421_v45 }
 0x747   :  { %845 = vrsqrt.f32 %v422_v46  ;;  %vm429_vm6 = vweird.f32 %v422_v46 }
 0x74d   :  { %v846_v47 = vpop.eup %845 }
 0x74e   :  { %v424_v49 = vmul.f32 %v846_v47, %v422_v46  ;;  %vm430_vm2 = vweird.f32 %v846_v47 }
 0x74f   :  { %vm431_vm12 = vmor %vm429_vm6, %vm430_vm2 }
 0x750   :  { %v425_v50 = vmul.f32 %v846_v47, %v424_v49 }
 0x752   :  { %v426_v51 = vmul.f32 0.5, %v425_v50 }
 0x754   :  { %v427_v52 = vsub.f32 1.5, %v426_v51 }
 0x756   :  { %v428_v53 = vmul.f32 %v846_v47, %v427_v52 }
 0x758   :  { %v432_v55 = vsel %vm431_vm12, %v846_v47, %v428_v53 }
 0x759   :  { %v433_v56 = vmul.f32 %v432_v55, %v416_v38 }
 0x75b   :  { %v437_v57 = vmul.f32 %v809_v54, %v433_v56 }
 0x75d   :  { %v441_v58 = vadd.f32 %v810_v48, %v437_v57 }
 0x75f   :  { %442 = vst.msk [vmem:[#allocation3] sm:$0xff] %vm58_vm0, %v441_v58 }
 0x774   :  { %v709_v59 = vpop.xlane.xlu0 %708 }
 0x775   :  { %v710_v60 = vmul.f32 %v709_v59, %v414_v37 }
 0x777   :  { %v711_v61 = vadd.f32 1e-05, %v710_v60 }
 0x779   :  { %847 = vrsqrt.f32 %v711_v61  ;;  %vm718_vm14 = vweird.f32 %v711_v61 }
 0x77f   :  { %v848_v62 = vpop.eup %847 }
 0x780   :  { %v713_v63 = vmul.f32 %v848_v62, %v711_v61  ;;  %vm719_vm13 = vweird.f32 %v848_v62 }
 0x781   :  { %vm720_vm15 = vmor %vm718_vm14, %vm719_vm13 }
 0x782   :  { %v714_v0 = vmul.f32 %v848_v62, %v713_v63 }
 0x784   :  { %v715_v1 = vmul.f32 0.5, %v714_v0 }
 0x786   :  { %v716_v2 = vsub.f32 1.5, %v715_v1 }
 0x788   :  { %v717_v3 = vmul.f32 %v848_v62, %v716_v2 }
 0x78a   :  { %v721_v6 = vsel %vm720_vm15, %v848_v62, %v717_v3 }
 0x78b   :  { %v722_v7 = vmul.f32 %v721_v6, %v705_v42 }
 0x78d   :  { %v723_v8 = vmul.f32 %v809_v54, %v722_v7 }
 0x78f   :  { %v724_v9 = vadd.f32 %v810_v48, %v723_v8 }
 0x791   :  { %726 = vst.msk [vmem:[#allocation3 + $0x8] sm:$0xff] %vm58_vm0, %v724_v9 }
 0x792   :  { %739 = dma.vmem_to_hbm [thread:$0]  %s732_s7, 256, %s734_s13, [#allocation4], %s887_s14, %s887_s14, %s884_s28  }
 0x793   :  { %873 = dma.done.wait [#allocation4], 256  }
 0x794   :  { %874 = vsyncadd [#allocation4], 4294967040 }
 0x795   :  { %744 = vsyncpa [#allocation4], 1 }

</bundles_post_ra>
